<compile_context>
chip_gen: v6e
topology: v6e:2x2x1
jax: 0.10.0
libtpu: 0.0.40
codegen_flags: <defaults>
</compile_context>

<pallas_src>
import jax
import jax.numpy as jnp
from jax.experimental import pallas as pl
from jax.experimental.pallas import tpu as pltpu

# --- constants implied by the module -----------------------------------------
IMAGE_SIZE = (3, 64, 64)                                            # (C, H, W)
IMAGE_LINEAR_SIZE = IMAGE_SIZE[0] * IMAGE_SIZE[1] * IMAGE_SIZE[2]   # 12288
MIDDLE_LINEAR_SIZE = IMAGE_SIZE[0] * IMAGE_SIZE[1]                  # 192
NUM_LABELS = 6                                                      # len(LABEL_NAMES)

TK = 4096           # K-tile of the first matmul  (12288 / 4096 = 3 steps)
TB_MAX = 512        # max batch tile (x tile bf16: 512*4096*2 B = 4 MB)
OUT_PAD = 128       # logits lane dim padded 6 -> 128 for unmasked stores


def _round_up(a, m):
    return (a + m - 1) // m * m


def mlp_kernel(x_ref, w1_ref, b1_ref, w2_ref, b2_ref, out_ref, acc_ref):
    """Grid = (batch tiles, K tiles).  K (axis 1) is the reduction axis.

    acc_ref accumulates x @ W1 in f32 for the current batch tile; on the last
    K-step we add the bias, apply ReLU, and run the tiny second matmul + bias
    to produce the (lane-padded) logits.
    """
    k = pl.program_id(1)

    @pl.when(k == 0)
    def _():
        acc_ref[...] = jnp.zeros_like(acc_ref)

    # bf16 x bf16 -> f32 accumulate on the MXU.
    acc_ref[...] += jnp.dot(
        x_ref[...], w1_ref[...], preferred_element_type=jnp.float32
    )

    @pl.when(k == pl.num_programs(1) - 1)
    def _():
        h = jnp.maximum(acc_ref[...] + b1_ref[...], 0.0)          # ReLU (f32)
        logits = (
            jnp.dot(h, w2_ref[...], preferred_element_type=jnp.float32)
            + b2_ref[...]
        )
        out_ref[...] = logits.astype(out_ref.dtype)


def mlp_classifier_forward(x, w1, b1, w2, b2):
    """x: (B, 3, 64, 64) float32 -> logits (B, 6) float32.

    w1: (12288, 192), b1: (192,), w2: (192, 6), b2: (6,)  — all float32.
    """
    B = x.shape[0]
    x2d = x.reshape(B, IMAGE_LINEAR_SIZE)       # == torch .view(-1, 12288)

    # bf16 streaming for the bandwidth-dominant operands.
    x_bf = x2d.astype(jnp.bfloat16)
    w1_bf = w1.astype(jnp.bfloat16)

    # Small f32 operands; pad the 6-wide output dim of layer 2 to 128 lanes.
    b1_2d = b1.reshape(1, MIDDLE_LINEAR_SIZE).astype(jnp.float32)
    w2_p = jnp.zeros((MIDDLE_LINEAR_SIZE, OUT_PAD), jnp.float32)
    w2_p = w2_p.at[:, :NUM_LABELS].set(w2)
    b2_p = jnp.zeros((1, OUT_PAD), jnp.float32).at[:, :NUM_LABELS].set(b2)

    # Batch tiling: small batches are a single full-extent block; large batches
    # are padded to a multiple of TB_MAX and tiled (TB divisible by 8).
    if B <= TB_MAX:
        tb, b_pad = B, B
    else:
        tb = TB_MAX
        b_pad = _round_up(B, tb)
    if b_pad != B:
        x_bf = jnp.pad(x_bf, ((0, b_pad - B), (0, 0)))

    n_b = b_pad // tb
    n_k = IMAGE_LINEAR_SIZE // TK

    out = pl.pallas_call(
        mlp_kernel,
        out_shape=jax.ShapeDtypeStruct((b_pad, OUT_PAD), jnp.float32),
        grid_spec=pltpu.PrefetchScalarGridSpec(
            num_scalar_prefetch=0,
            grid=(n_b, n_k),                       # batch outer, K inner
            in_specs=[
                # x: (batch tile, K tile) of the flattened image, bf16
                pl.BlockSpec((tb, TK), lambda i, k: (i, k)),
                # W1: matching K-tiles, bf16
                pl.BlockSpec((TK, MIDDLE_LINEAR_SIZE), lambda i, k: (k, 0)),
                # b1, W2 (padded), b2 (padded): small, resident for all steps
                pl.BlockSpec((1, MIDDLE_LINEAR_SIZE), lambda i, k: (0, 0)),
                pl.BlockSpec((MIDDLE_LINEAR_SIZE, OUT_PAD), lambda i, k: (0, 0)),
                pl.BlockSpec((1, OUT_PAD), lambda i, k: (0, 0)),
            ],
            out_specs=pl.BlockSpec((tb, OUT_PAD), lambda i, k: (i, 0)),
            scratch_shapes=[pltpu.VMEM((tb, MIDDLE_LINEAR_SIZE), jnp.float32)],
        ),
        compiler_params=pltpu.CompilerParams(
            dimension_semantics=("parallel", "arbitrary"),  # batch ∥, K reduce
            vmem_limit_bytes=32 * 1024 * 1024,
        ),
    )(x_bf, w1_bf, b1_2d, w2_p, b2_p)

    return out[:B, :NUM_LABELS]


def init_params(key):
    """Deterministic init mimicking nn.Linear's U(-1/sqrt(fan_in), 1/sqrt(fan_in))."""
    k1, k2, k3, k4 = jax.random.split(key, 4)
    lim1 = 1.0 / jnp.sqrt(jnp.float32(IMAGE_LINEAR_SIZE))
    lim2 = 1.0 / jnp.sqrt(jnp.float32(MIDDLE_LINEAR_SIZE))
    w1 = jax.random.uniform(
        k1, (IMAGE_LINEAR_SIZE, MIDDLE_LINEAR_SIZE), jnp.float32, -lim1, lim1
    )
    b1 = jax.random.uniform(k2, (MIDDLE_LINEAR_SIZE,), jnp.float32, -lim1, lim1)
    w2 = jax.random.uniform(
        k3, (MIDDLE_LINEAR_SIZE, NUM_LABELS), jnp.float32, -lim2, lim2
    )
    b2 = jax.random.uniform(k4, (NUM_LABELS,), jnp.float32, -lim2, lim2)
    return w1, b1, w2, b2


if __name__ == "__main__":
    key = jax.random.PRNGKey(0)
    kx, kp = jax.random.split(key)

    B = 2
    x = jax.random.normal(kx, (B,) + IMAGE_SIZE, dtype=jnp.float32)
    w1, b1, w2, b2 = init_params(kp)

    logits = mlp_classifier_forward(x, w1, b1, w2, b2)
    logits = jax.block_until_ready(logits)

    # pure-JAX f32 reference (same math as the torch module); tolerance is
    # loosened because x/W1 are streamed in bf16 (f32 accumulation).
    x2d = x.reshape(B, IMAGE_LINEAR_SIZE)
    ref = jnp.maximum(x2d @ w1 + b1, 0.0) @ w2 + b2

    assert logits.shape == (B, NUM_LABELS)
    max_err = float(jnp.max(jnp.abs(logits - ref)))
    assert jnp.allclose(logits, ref, atol=3e-2, rtol=3e-2), max_err
    print("KERNEL_OK")
</pallas_src>

<mosaic_0001>
module attributes {stable_mosaic.version = 11 : i64} {
  func.func @mlp_kernel(%arg0: i32, %arg1: i32, %arg2: memref<2x4096xbf16, #tpu.memory_space<vmem>>, %arg3: memref<4096x192xbf16, #tpu.memory_space<vmem>>, %arg4: memref<1x192xf32, #tpu.memory_space<vmem>>, %arg5: memref<192x128xf32, #tpu.memory_space<vmem>>, %arg6: memref<1x128xf32, #tpu.memory_space<vmem>>, %arg7: memref<2x128xf32, #tpu.memory_space<vmem>>, %arg8: memref<2x192xf32, #tpu.memory_space<vmem>>) attributes {dimension_semantics = [#tpu.dimension_semantics<parallel>, #tpu.dimension_semantics<arbitrary>], iteration_bounds = array<i64: 1, 3>, scalar_prefetch = 0 : i64, scratch_operands = 1 : i64, tpu.core_type = #tpu.core_type<tc>, window_params = [{transform_indices = @transform_0, window_bounds = array<i64: 2, 4096>}, {transform_indices = @transform_1, window_bounds = array<i64: 4096, 192>}, {pipeline_mode = #tpu.pipeline_mode<synchronous>, transform_indices = @transform_2, window_bounds = array<i64: 1, 192>}, {pipeline_mode = #tpu.pipeline_mode<synchronous>, transform_indices = @transform_3, window_bounds = array<i64: 192, 128>}, {pipeline_mode = #tpu.pipeline_mode<synchronous>, transform_indices = @transform_4, window_bounds = array<i64: 1, 128>}, {transform_indices = @transform_5, window_bounds = array<i64: 2, 128>}]} {
    %c0_i32 = arith.constant 0 : i32
    %0 = arith.cmpi eq, %arg1, %c0_i32 : i32
    %1 = arith.extui %0 : i1 to i32
    %c0_i32_0 = arith.constant 0 : i32
    %2 = arith.cmpi ne, %1, %c0_i32_0 : i32
    scf.if %2 {
      %cst_9 = arith.constant 0.000000e+00 : f32
      %12 = vector.broadcast %cst_9 : f32 to vector<2x192xf32>
      %c0_10 = arith.constant 0 : index
      %c0_11 = arith.constant 0 : index
      %13 = vector.load %arg8[%c0_10, %c0_11] : memref<2x192xf32, #tpu.memory_space<vmem>>, vector<2x192xf32>
      tpu.vector_store %arg8[%c0_10, %c0_11], %12 {strides = array<i32>} : memref<2x192xf32, #tpu.memory_space<vmem>>, vector<2x192xf32>,
    } else {
    }
    %c0 = arith.constant 0 : index
    %c0_1 = arith.constant 0 : index
    %3 = vector.load %arg8[%c0, %c0_1] : memref<2x192xf32, #tpu.memory_space<vmem>>, vector<2x192xf32>
    %c0_2 = arith.constant 0 : index
    %c0_3 = arith.constant 0 : index
    %4 = vector.load %arg2[%c0_2, %c0_3] : memref<2x4096xbf16, #tpu.memory_space<vmem>>, vector<2x4096xbf16>
    %c0_4 = arith.constant 0 : index
    %c0_5 = arith.constant 0 : index
    %5 = vector.load %arg3[%c0_4, %c0_5] : memref<4096x192xbf16, #tpu.memory_space<vmem>>, vector<4096x192xbf16>
    %cst = arith.constant dense<0.000000e+00> : vector<2x192xf32>
    %6 = tpu.matmul %4, %5, %cst {dimension_numbers = #tpu.dot_dimension_numbers<[1], [0], [0], [1], [0, 0, 1, 1], [], []>} : vector<2x4096xbf16>, vector<4096x192xbf16>, vector<2x192xf32> -> vector<2x192xf32>
    %7 = arith.addf %3, %6 : vector<2x192xf32>
    %c0_6 = arith.constant 0 : index
    %c0_7 = arith.constant 0 : index
    %8 = vector.load %arg8[%c0_6, %c0_7] : memref<2x192xf32, #tpu.memory_space<vmem>>, vector<2x192xf32>
    tpu.vector_store %arg8[%c0_6, %c0_7], %7 {strides = array<i32>} : memref<2x192xf32, #tpu.memory_space<vmem>>, vector<2x192xf32>,
    %c2_i32 = arith.constant 2 : i32
    %9 = arith.cmpi eq, %arg1, %c2_i32 : i32
    %10 = arith.extui %9 : i1 to i32
    %c0_i32_8 = arith.constant 0 : i32
    %11 = arith.cmpi ne, %10, %c0_i32_8 : i32
    scf.if %11 {
      %c0_9 = arith.constant 0 : index
      %c0_10 = arith.constant 0 : index
      %12 = vector.load %arg8[%c0_9, %c0_10] : memref<2x192xf32, #tpu.memory_space<vmem>>, vector<2x192xf32>
      %c0_11 = arith.constant 0 : index
      %c0_12 = arith.constant 0 : index
      %13 = vector.load %arg4[%c0_11, %c0_12] : memref<1x192xf32, #tpu.memory_space<vmem>>, vector<1x192xf32>
      %14 = vector.broadcast %13 : vector<1x192xf32> to vector<2x192xf32>
      %15 = arith.addf %12, %14 : vector<2x192xf32>
      %cst_13 = arith.constant 0.000000e+00 : f32
      %16 = vector.broadcast %cst_13 : f32 to vector<2x192xf32>
      %17 = arith.maximumf %15, %16 : vector<2x192xf32>
      %c0_14 = arith.constant 0 : index
      %c0_15 = arith.constant 0 : index
      %18 = vector.load %arg5[%c0_14, %c0_15] : memref<192x128xf32, #tpu.memory_space<vmem>>, vector<192x128xf32>
      %cst_16 = arith.constant dense<0.000000e+00> : vector<2x128xf32>
      %19 = tpu.matmul %17, %18, %cst_16 {dimension_numbers = #tpu.dot_dimension_numbers<[1], [0], [0], [1], [0, 0, 1, 1], [], []>} : vector<2x192xf32>, vector<192x128xf32>, vector<2x128xf32> -> vector<2x128xf32>
      %c0_17 = arith.constant 0 : index
      %c0_18 = arith.constant 0 : index
      %20 = vector.load %arg6[%c0_17, %c0_18] : memref<1x128xf32, #tpu.memory_space<vmem>>, vector<1x128xf32>
      %21 = vector.broadcast %20 : vector<1x128xf32> to vector<2x128xf32>
      %22 = arith.addf %19, %21 : vector<2x128xf32>
      %c0_19 = arith.constant 0 : index
      %c0_20 = arith.constant 0 : index
      %23 = vector.load %arg7[%c0_19, %c0_20] : memref<2x128xf32, #tpu.memory_space<vmem>>, vector<2x128xf32>
      tpu.vector_store %arg7[%c0_19, %c0_20], %22 {strides = array<i32>} : memref<2x128xf32, #tpu.memory_space<vmem>>, vector<2x128xf32>,
    } else {
    }
    return
  }
  func.func @transform_0(%arg0: i32, %arg1: i32) -> (i32, i32) {
    %c0_i32 = arith.constant 0 : i32
    return %arg0, %arg1 : i32, i32
  }
  func.func @transform_1(%arg0: i32, %arg1: i32) -> (i32, i32) {
    %c0_i32 = arith.constant 0 : i32
    %c0_i32_0 = arith.constant 0 : i32
    return %arg1, %c0_i32 : i32, i32
  }
  func.func @transform_2(%arg0: i32, %arg1: i32) -> (i32, i32) {
    %c0_i32 = arith.constant 0 : i32
    %c0_i32_0 = arith.constant 0 : i32
    %c0_i32_1 = arith.constant 0 : i32
    return %c0_i32, %c0_i32_0 : i32, i32
  }
  func.func @transform_3(%arg0: i32, %arg1: i32) -> (i32, i32) {
    %c0_i32 = arith.constant 0 : i32
    %c0_i32_0 = arith.constant 0 : i32
    %c0_i32_1 = arith.constant 0 : i32
    return %c0_i32, %c0_i32_0 : i32, i32
  }
  func.func @transform_4(%arg0: i32, %arg1: i32) -> (i32, i32) {
    %c0_i32 = arith.constant 0 : i32
    %c0_i32_0 = arith.constant 0 : i32
    %c0_i32_1 = arith.constant 0 : i32
    return %c0_i32, %c0_i32_0 : i32, i32
  }
  func.func @transform_5(%arg0: i32, %arg1: i32) -> (i32, i32) {
    %c0_i32 = arith.constant 0 : i32
    %c0_i32_0 = arith.constant 0 : i32
    return %arg0, %c0_i32 : i32, i32
  }
}

</mosaic_0001>

<bundles_post_ra>
// kernel: tpu_custom_call.1
= control target key start
LH: loop header
LB: loop body
LE: loop exit
PB: predicated region body
PF: predicated region fallthrough
CT: control target
= control target key end

     0   :  { %10 = vsyncpa [#allocation4], 0  ;;  %s5893_s18 = smov 0   ;;  %s5895_s19 = smov 0   ;;  %s6678_s0 = inlined_call_operand.vmem [shape: bf16[2,12288], index: 0, kind: input, shape index: {}]   ;;  %s6679_s1 = inlined_call_operand.vmem [shape: bf16[12288,192], index: 1, kind: input, shape index: {}]   ;;  %s6680_s2 = inlined_call_operand.vmem [shape: f32[1,192], index: 2, kind: input, shape index: {}]   ;;  %s6681_s3 = inlined_call_operand.vmem [shape: f32[192,128], index: 3, kind: input, shape index: {}]   ;;  %s6682_s4 = inlined_call_operand.vmem [shape: f32[1,128], index: 4, kind: input, shape index: {}]   ;;  %s6683_s5 = inlined_call_operand.hbm [shape: f32[2,128], index: 5, kind: output, shape index: {}]  }
   0x1   :  { %s5897_s20 = smov 0  }
   0x2 LB: > { %s4470_s21 = sadd.s32 4294967295, %s5856_s20   ;;  %s25_s22 = sadd.s32 1, %s5852_s19  ;;  %s5856_s20 = sphi %s5897_s20, %s16_s20   ;;  %s5852_s19 = sphi %s5895_s19, %s6686_s19   ;;  %s5848_s18 = sphi %s5893_s18, %s6685_s18  }
   0x3   : > { %p26_p0 = scmp.ge.s32.totalorder %s25_s22, 3  ;;  %p4473_p1 = scmp.ge.s32.totalorder %s5856_s20, 1 }
   0x4   : > { %p218_p2 = scmp.lt.s32.totalorder %s5856_s20, 4 }
   0x5   : > { %s6688_s22 = smov (%p26_p0, %s25_s22), 0 }
   0x6   : > { %p219_p3 = pnand %p4473_p1, %p218_p2 }
   0x7   : > { %s4474_s23 = sshll.u32 (!%p219_p3), %s5848_s18, 5  ;;  %s4475_s24 = sshll.u32 (!%p219_p3), %s5848_s18, 9 }
   0x8   : > { %222 = sbr.rel (%p219_p3) target bundleno = 1002 (0x3ea), region = 40  ;;  %p253_p4 = scmp.lt.s32.totalorder (!%p219_p3), %s4474_s23, 95 }
   0x9   : > { %p260_p5 = scmp.lt.s32.totalorder (!%p219_p3), %s4475_s24, 1535  ;;  %p4478_p6 = scmp.ne.s32.totalorder (!%p219_p3), %s5848_s18, 0 }
   0xd   : > { %s6690_s23 = smov (!%p253_p4, %s4474_s23), 95  ;;  %s6692_s24 = smov (!%p260_p5, %s4475_s24), 1535 }
   0xe   : > { %s5919_s27 = scalar_lea.vmem %s6678_s0, %s6690_s23  ;;  %s4998_s28 = sshll.u32 %s6692_s24, 3 }
   0xf   : > { %s5924_s6 = scalar_lea.vmem %s6679_s1, %s4998_s28  ;;  %269 = sbr.rel (%p4478_p6) target bundleno = 23 (0x17), region = 44 }
  0x14   : > { %vm270_vm0 = vcmask 1041408   ;;  %vm271_vm1 = vcmask 519170   ;;  %v5858_v0 = vmov 0.0  }
  0x15   : > { %vm272_vm2 = vmor %vm271_vm1, %vm270_vm0 }
  0x16   : > { %273 = vst.msk [vmem:[#allocation2] sm:$0xf] %vm272_vm2, %v5858_v0 }
  0x17 PF: > { %v5034_v1 = vld [vmem:[%s5924_s6 + $0x74] ss:$8 sps:$4 sm:$0xff]   ;;  %v5038_v3 = vld [vmem:[%s5924_s6 + $0x70] ss:$8 sps:$4 sm:$0xff]   ;;  %v5040_v5 = vld [vmem:[%s5924_s6 + $0x64] ss:$8 sps:$4 sm:$0xff]   ;;  %v799_v39 = vlaneseq }
  0x18   : > { %v5036_v2 = vld [vmem:[%s5924_s6 + $0x174] ss:$8 sps:$4 sm:$0xff]   ;;  %3583 = vmatprep.subr.bf16.mxu0 %v5034_v1  ;;  %v5039_v4 = vld [vmem:[%s5924_s6 + $0x170] ss:$8 sps:$4 sm:$0xff]   ;;  %v5042_v6 = vld [vmem:[%s5924_s6 + $0x164] ss:$8 sps:$4 sm:$0xff]  }
  0x19   : > { %3624 = vmatprep.subr.bf16.mxu1 %v5036_v2  ;;  %3584 = vmatpush1.bf16.msra.mxu0 %v5038_v3  ;;  %v5044_v7 = vld [vmem:[%s5924_s6 + $0x60] ss:$8 sps:$4 sm:$0xff]   ;;  %v5046_v9 = vld [vmem:[%s5924_s6 + $0x54] ss:$8 sps:$4 sm:$0xff]   ;;  %v5050_v11 = vld [vmem:[%s5924_s6 + $0x50] ss:$8 sps:$4 sm:$0xff]  }
  0x1a   : > { %3625 = vmatpush1.bf16.msra.mxu1 %v5039_v4  ;;  %3585 = vmatprep.subr.bf16.mxu0 %v5040_v5  ;;  %v5045_v8 = vld [vmem:[%s5924_s6 + $0x160] ss:$8 sps:$4 sm:$0xff]   ;;  %v5048_v10 = vld [vmem:[%s5924_s6 + $0x154] ss:$8 sps:$4 sm:$0xff]   ;;  %v5051_v12 = vld [vmem:[%s5924_s6 + $0x150] ss:$8 sps:$4 sm:$0xff]  }
  0x1b   : > { %3626 = vmatprep.subr.bf16.mxu1 %v5042_v6  ;;  %v5052_v13 = vld [vmem:[%s5924_s6 + $0x44] ss:$8 sps:$4 sm:$0xff]   ;;  %v5056_v15 = vld [vmem:[%s5924_s6 + $0x40] ss:$8 sps:$4 sm:$0xff]   ;;  %v5058_v17 = vld [vmem:[%s5924_s6 + $0x34] ss:$8 sps:$4 sm:$0xff]  }
  0x1c   : > { %v5054_v14 = vld [vmem:[%s5924_s6 + $0x144] ss:$8 sps:$4 sm:$0xff]   ;;  %v5057_v16 = vld [vmem:[%s5924_s6 + $0x140] ss:$8 sps:$4 sm:$0xff]   ;;  %v5060_v18 = vld [vmem:[%s5924_s6 + $0x134] ss:$8 sps:$4 sm:$0xff]  }
  0x1d   : > { %3586 = vmatpush1.bf16.msra.mxu0 %v5044_v7  ;;  %v5062_v19 = vld [vmem:[%s5924_s6 + $0x30] ss:$8 sps:$4 sm:$0xff]   ;;  %v5064_v21 = vld [vmem:[%s5924_s6 + $0x24] ss:$8 sps:$4 sm:$0xff]   ;;  %v5068_v23 = vld [vmem:[%s5924_s6 + $0x20] ss:$8 sps:$4 sm:$0xff]  }
  0x1e   : > { %3627 = vmatpush1.bf16.msra.mxu1 %v5045_v8  ;;  %3587 = vmatprep.subr.bf16.mxu0 %v5046_v9  ;;  %v5063_v20 = vld [vmem:[%s5924_s6 + $0x130] ss:$8 sps:$4 sm:$0xff]   ;;  %v5066_v22 = vld [vmem:[%s5924_s6 + $0x124] ss:$8 sps:$4 sm:$0xff]   ;;  %v5069_v24 = vld [vmem:[%s5924_s6 + $0x120] ss:$8 sps:$4 sm:$0xff]  }
  0x1f   : > { %3628 = vmatprep.subr.bf16.mxu1 %v5048_v10  ;;  %v5070_v25 = vld [vmem:[%s5924_s6 + $0x14] ss:$8 sps:$4 sm:$0xff]   ;;  %v5074_v27 = vld [vmem:[%s5924_s6 + $0x10] ss:$8 sps:$4 sm:$0xff]   ;;  %v5076_v29 = vld [vmem:[%s5924_s6 + $0x4] ss:$8 sps:$4 sm:$0xff]  }
  0x20   : > { %v5072_v26 = vld [vmem:[%s5924_s6 + $0x114] ss:$8 sps:$4 sm:$0xff]   ;;  %v5075_v28 = vld [vmem:[%s5924_s6 + $0x110] ss:$8 sps:$4 sm:$0xff]   ;;  %v5078_v30 = vld [vmem:[%s5924_s6 + $0x104] ss:$8 sps:$4 sm:$0xff]  }
  0x21   : > { %3588 = vmatpush1.bf16.msra.mxu0 %v5050_v11  ;;  %v5080_v31 = vld [vmem:[%s5924_s6] ss:$8 sps:$4 sm:$0xff]   ;;  %v5082_v33 = vld [vmem:[%s5924_s6 + $0xf4] ss:$8 sps:$4 sm:$0xff]   ;;  %v5086_v35 = vld [vmem:[%s5924_s6 + $0xf0] ss:$8 sps:$4 sm:$0xff]  }
  0x22   : > { %3629 = vmatpush1.bf16.msra.mxu1 %v5051_v12  ;;  %3589 = vmatprep.subr.bf16.mxu0 %v5052_v13  ;;  %v5081_v32 = vld [vmem:[%s5924_s6 + $0x100] ss:$8 sps:$4 sm:$0xff]   ;;  %v5084_v34 = vld [vmem:[%s5924_s6 + $0x1f4] ss:$8 sps:$4 sm:$0xff]   ;;  %v5087_v36 = vld [vmem:[%s5924_s6 + $0x1f0] ss:$8 sps:$4 sm:$0xff]  }
  0x23   : > { %3630 = vmatprep.subr.bf16.mxu1 %v5054_v14  ;;  %v5859_v37 = vmov 1966171168   ;;  %v5088_v40 = vld [vmem:[%s5924_s6 + $0xe4] ss:$8 sps:$4 sm:$0xff]   ;;  %v5092_v42 = vld [vmem:[%s5924_s6 + $0xe0] ss:$8 sps:$4 sm:$0xff]  }
  0x24   : > { %v797_v38 = vunpack.c.l.s4 %v5859_v37  ;;  %v5090_v41 = vld [vmem:[%s5924_s6 + $0x1e4] ss:$8 sps:$4 sm:$0xff]   ;;  %v5966_v44 = vshrl.u32 %v799_v39, 7  ;;  %v5093_v45 = vld [vmem:[%s5924_s6 + $0x1e0] ss:$8 sps:$4 sm:$0xff]   ;;  %vm4251_vm3 = vcmask 1041408  }
  0x25   : > { %3590 = vmatpush1.bf16.msra.mxu0 %v5056_v15  ;;  %v5094_v46 = vld [vmem:[%s5924_s6 + $0xd4] ss:$8 sps:$4 sm:$0xff]   ;;  %v5098_v48 = vld [vmem:[%s5924_s6 + $0xd0] ss:$8 sps:$4 sm:$0xff]   ;;  %v5100_v51 = vld [vmem:[%s5924_s6 + $0xc4] ss:$8 sps:$4 sm:$0xff]  }
  0x26   : > { %3631 = vmatpush1.bf16.msra.mxu1 %v5057_v16  ;;  %3591 = vmatprep.subr.bf16.mxu0 %v5058_v17  ;;  %v798_v43 = vunpack.c.0.s8 %v797_v38  ;;  %v5096_v47 = vld [vmem:[%s5924_s6 + $0x1d4] ss:$8 sps:$4 sm:$0xff]   ;;  %v5099_v49 = vld [vmem:[%s5924_s6 + $0x1d0] ss:$8 sps:$4 sm:$0xff]   ;;  %v5102_v52 = vld [vmem:[%s5924_s6 + $0x1c4] ss:$8 sps:$4 sm:$0xff]  }
  0x27   : > { %3632 = vmatprep.subr.bf16.mxu1 %v5060_v18  ;;  %v275_v53 = vld [vmem:[%s5919_s27] sm:$0xff]  ;;  %v5106_v57 = vld [vmem:[%s5924_s6 + $0xb4] ss:$8 sps:$4 sm:$0xff]   ;;  %v5110_v60 = vld [vmem:[%s5924_s6 + $0xb0] ss:$8 sps:$4 sm:$0xff]   ;;  %vm4252_vm4 = vcmask 519170  }
  0x28   : > { %v5974_v50 = vsub.s32 %v798_v43, %v5966_v44  ;;  %v5104_v54 = vld [vmem:[%s5924_s6 + $0xc0] ss:$8 sps:$4 sm:$0xff]   ;;  %v5108_v58 = vld [vmem:[%s5924_s6 + $0x1b4] ss:$8 sps:$4 sm:$0xff]   ;;  %v5111_v62 = vld [vmem:[%s5924_s6 + $0x1b0] ss:$8 sps:$4 sm:$0xff]   ;;  %v795_v2 = vcombine.high %v275_v53, %v275_v53 }
  0x29   : > { %3592 = vmatpush1.bf16.msra.mxu0 %v5062_v19  ;;  %v5105_v56 = vld [vmem:[%s5924_s6 + $0x1c0] ss:$8 sps:$4 sm:$0xff]   ;;  %v5112_v63 = vld [vmem:[%s5924_s6 + $0xa4] ss:$8 sps:$4 sm:$0xff]   ;;  %v5118_v5 = vld [vmem:[%s5924_s6 + $0x94] ss:$8 sps:$4 sm:$0xff]  }
  0x2a   : > { %3633 = vmatpush1.bf16.msra.mxu1 %v5063_v20  ;;  %3593 = vmatprep.subr.bf16.mxu0 %v5064_v21  ;;  %v802_v55 = vrot.slane %v275_v53, %v5974_v50  ;;  %v5114_v0 = vld [vmem:[%s5924_s6 + $0x1a4] ss:$8 sps:$4 sm:$0xff]   ;;  %v5116_v3 = vld [vmem:[%s5924_s6 + $0xa0] ss:$8 sps:$4 sm:$0xff]   ;;  %v5120_v6 = vld [vmem:[%s5924_s6 + $0x194] ss:$8 sps:$4 sm:$0xff]   ;;  %v5994_v7 = vrot.slane %v795_v2, %v5974_v50 }
  0x2b   : > { %3634 = vmatprep.subr.bf16.mxu1 %v5066_v22  ;;  %v5117_v4 = vld [vmem:[%s5924_s6 + $0x1a0] ss:$8 sps:$4 sm:$0xff]   ;;  %v5122_v8 = vld [vmem:[%s5924_s6 + $0x90] ss:$8 sps:$4 sm:$0xff]   ;;  %v5124_v10 = vld [vmem:[%s5924_s6 + $0x84] ss:$8 sps:$4 sm:$0xff]  }
  0x2c   : > { %v810_v59 = vcombine.high %v802_v55, %v802_v55  ;;  %v5123_v9 = vld [vmem:[%s5924_s6 + $0x190] ss:$8 sps:$4 sm:$0xff]   ;;  %v5126_v11 = vld [vmem:[%s5924_s6 + $0x184] ss:$8 sps:$4 sm:$0xff]   ;;  %v811_v12 = vcombine.high %v5994_v7, %v5994_v7  ;;  %v5128_v13 = vld [vmem:[%s5924_s6 + $0x80] ss:$8 sps:$4 sm:$0xff]   ;;  %v818_v14 = vrot.slane %v802_v55, %v5974_v50 }
  0x2d   : > { %3594 = vmatpush1.bf16.msra.mxu0 %v5068_v23  ;;  %v5129_v15 = vld [vmem:[%s5924_s6 + $0x180] ss:$8 sps:$4 sm:$0xff]   ;;  %v5133_v16 = vld [vmem:[%s5924_s6 + $0x274] ss:$8 sps:$4 sm:$0xff]   ;;  %v5131_v20 = vld [vmem:[%s5924_s6 + $0x270] ss:$8 sps:$4 sm:$0xff]  }
  0x2e   : > { %3635 = vmatpush1.bf16.msra.mxu1 %v5069_v24  ;;  %3595 = vmatprep.subr.bf16.mxu0 %v5070_v25  ;;  %v832_v61 = vrot.slane %v810_v59, %v5974_v50  ;;  %v5136_v17 = vld [vmem:[%s5924_s6 + $0x374] ss:$8 sps:$4 sm:$0xff]   ;;  %v839_v18 = vrot.slane %v811_v12, %v5974_v50  ;;  %v840_v19 = vcombine.high %v818_v14, %v818_v14  ;;  %v5134_v21 = vld [vmem:[%s5924_s6 + $0x370] ss:$8 sps:$4 sm:$0xff]   ;;  %v5139_v22 = vld [vmem:[%s5924_s6 + $0x264] ss:$8 sps:$4 sm:$0xff]  }
  0x2f   : > { %3636 = vmatprep.subr.bf16.mxu1 %v5072_v26  ;;  %v5142_v23 = vld [vmem:[%s5924_s6 + $0x364] ss:$8 sps:$4 sm:$0xff]   ;;  %v5137_v25 = vld [vmem:[%s5924_s6 + $0x260] ss:$8 sps:$4 sm:$0xff]   ;;  %v5155_v37 = vld [vmem:[%s5924_s6 + $0x230] ss:$8 sps:$4 sm:$0xff]  }
  0x30   : > { %v842_v1 = vcombine.high %v832_v61, %v832_v61  ;;  %3615 = vmatprep.mubr.bf16.mxu0 %v832_v61  ;;  %v843_v24 = vcombine.high %v839_v18, %v839_v18  ;;  %v5140_v26 = vld [vmem:[%s5924_s6 + $0x360] ss:$8 sps:$4 sm:$0xff]   ;;  %v5158_v38 = vld [vmem:[%s5924_s6 + $0x330] ss:$8 sps:$4 sm:$0xff]   ;;  %v5163_v39 = vld [vmem:[%s5924_s6 + $0x224] ss:$8 sps:$4 sm:$0xff]  }
  0x31   : > { %3596 = vmatpush1.bf16.msra.mxu0 %v5074_v27  ;;  %v5145_v27 = vld [vmem:[%s5924_s6 + $0x254] ss:$8 sps:$4 sm:$0xff]   ;;  %v5179_v55 = vld [vmem:[%s5924_s6 + $0x2f0] ss:$8 sps:$4 sm:$0xff]   ;;  %v5185_v59 = vld [vmem:[%s5924_s6 + $0x2e0] ss:$8 sps:$4 sm:$0xff]  }
  0x32   : > { %3637 = vmatpush1.bf16.msra.mxu1 %v5075_v28  ;;  %3597 = vmatprep.subr.bf16.mxu0 %v5076_v29  ;;  %v5148_v28 = vld [vmem:[%s5924_s6 + $0x354] ss:$8 sps:$4 sm:$0xff]   ;;  %v5143_v29 = vld [vmem:[%s5924_s6 + $0x250] ss:$8 sps:$4 sm:$0xff]   ;;  %v5202_v2 = vld [vmem:[%s5924_s6 + $0x3c4] ss:$8 sps:$4 sm:$0xff]  }
  0x33   : > { %3638 = vmatprep.subr.bf16.mxu1 %v5078_v30  ;;  %3656 = vmatprep.mubr.bf16.mxu1 %v842_v1  ;;  %v5146_v30 = vld [vmem:[%s5924_s6 + $0x350] ss:$8 sps:$4 sm:$0xff]   ;;  %v5169_v43 = vld [vmem:[%s5924_s6 + $0x214] ss:$8 sps:$4 sm:$0xff]   ;;  %v5199_v1 = vld [vmem:[%s5924_s6 + $0x2c4] ss:$8 sps:$4 sm:$0xff]  }
  0x34   : > { %v5181_v53 = vld [vmem:[%s5924_s6 + $0x2f4] ss:$8 sps:$4 sm:$0xff]   ;;  %v5209_v12 = vld [vmem:[%s5924_s6 + $0x2a0] ss:$8 sps:$4 sm:$0xff]   ;;  %vm4253_vm5 = vmor %vm4252_vm4, %vm4251_vm3  ;;  %p4991_p7 = scmp.ne.s32.totalorder %s5848_s18, 2 }
  0x35   : > { %3598 = vmatpush1.bf16.msra.mxu0 %v5080_v31  ;;  %v5151_v31 = vld [vmem:[%s5924_s6 + $0x244] ss:$8 sps:$4 sm:$0xff]   ;;  %v5193_v61 = vld [vmem:[%s5924_s6 + $0x2d4] ss:$8 sps:$4 sm:$0xff]  }
  0x36   : > { %3639 = vmatpush1.bf16.msra.mxu1 %v5081_v32  ;;  %3599 = vmatprep.subr.bf16.mxu0 %v5082_v33  ;;  %v5154_v32 = vld [vmem:[%s5924_s6 + $0x344] ss:$8 sps:$4 sm:$0xff]   ;;  %v5149_v33 = vld [vmem:[%s5924_s6 + $0x240] ss:$8 sps:$4 sm:$0xff]  }
  0x37   : > { %3640 = vmatprep.subr.bf16.mxu1 %v5084_v34  ;;  %v5152_v34 = vld [vmem:[%s5924_s6 + $0x340] ss:$8 sps:$4 sm:$0xff]  }
  0x39   : > { %3600 = vmatpush2.bf16.msra.mxu0 %v5086_v35  ;;  %v5157_v35 = vld [vmem:[%s5924_s6 + $0x234] ss:$8 sps:$4 sm:$0xff]  }
  0x3a   : > { %3641 = vmatpush2.bf16.msra.mxu1 %v5087_v36  ;;  %3601 = vmatprep.subr.bf16.mxu0 %v5088_v40  ;;  %v5160_v36 = vld [vmem:[%s5924_s6 + $0x334] ss:$8 sps:$4 sm:$0xff]   ;;  %v5166_v40 = vld [vmem:[%s5924_s6 + $0x324] ss:$8 sps:$4 sm:$0xff]  }
  0x3b   : > { %3642 = vmatprep.subr.bf16.mxu1 %v5090_v41  ;;  %v5161_v41 = vld [vmem:[%s5924_s6 + $0x220] ss:$8 sps:$4 sm:$0xff]  }
  0x3d   : > { %3602 = vmatpush2.bf16.msra.mxu0 %v5092_v42  ;;  %v5164_v42 = vld [vmem:[%s5924_s6 + $0x320] ss:$8 sps:$4 sm:$0xff]  }
  0x3e   : > { %3643 = vmatpush2.bf16.msra.mxu1 %v5093_v45  ;;  %3603 = vmatprep.subr.bf16.mxu0 %v5094_v46  ;;  %v5172_v45 = vld [vmem:[%s5924_s6 + $0x314] ss:$8 sps:$4 sm:$0xff]   ;;  %v5167_v46 = vld [vmem:[%s5924_s6 + $0x210] ss:$8 sps:$4 sm:$0xff]  }
  0x3f   : > { %3644 = vmatprep.subr.bf16.mxu1 %v5096_v47  ;;  %v5170_v47 = vld [vmem:[%s5924_s6 + $0x310] ss:$8 sps:$4 sm:$0xff]  }
  0x41   : > { %3604 = vmatpush2.bf16.msra.mxu0 %v5098_v48  ;;  %v5175_v48 = vld [vmem:[%s5924_s6 + $0x204] ss:$8 sps:$4 sm:$0xff]  }
  0x42   : > { %3645 = vmatpush2.bf16.msra.mxu1 %v5099_v49  ;;  %3605 = vmatprep.subr.bf16.mxu0 %v5100_v51  ;;  %v5178_v49 = vld [vmem:[%s5924_s6 + $0x304] ss:$8 sps:$4 sm:$0xff]   ;;  %v5173_v51 = vld [vmem:[%s5924_s6 + $0x200] ss:$8 sps:$4 sm:$0xff]  }
  0x43   : > { %3646 = vmatprep.subr.bf16.mxu1 %v5102_v52  ;;  %v5176_v52 = vld [vmem:[%s5924_s6 + $0x300] ss:$8 sps:$4 sm:$0xff]  }
  0x45   : > { %3606 = vmatpush2.bf16.msra.mxu0 %v5104_v54  ;;  %v5184_v54 = vld [vmem:[%s5924_s6 + $0x3f4] ss:$8 sps:$4 sm:$0xff]  }
  0x46   : > { %3647 = vmatpush2.bf16.msra.mxu1 %v5105_v56  ;;  %3607 = vmatprep.subr.bf16.mxu0 %v5106_v57  ;;  %v5182_v56 = vld [vmem:[%s5924_s6 + $0x3f0] ss:$8 sps:$4 sm:$0xff]   ;;  %v5187_v57 = vld [vmem:[%s5924_s6 + $0x2e4] ss:$8 sps:$4 sm:$0xff]  }
  0x47   : > { %3648 = vmatprep.subr.bf16.mxu1 %v5108_v58  ;;  %v5190_v58 = vld [vmem:[%s5924_s6 + $0x3e4] ss:$8 sps:$4 sm:$0xff]  }
  0x49   : > { %3608 = vmatpush2.bf16.msra.mxu0 %v5110_v60  ;;  %v5188_v60 = vld [vmem:[%s5924_s6 + $0x3e0] ss:$8 sps:$4 sm:$0xff]  }
  0x4a   : > { %3649 = vmatpush2.bf16.msra.mxu1 %v5111_v62  ;;  %3609 = vmatprep.subr.bf16.mxu0 %v5112_v63  ;;  %v5196_v62 = vld [vmem:[%s5924_s6 + $0x3d4] ss:$8 sps:$4 sm:$0xff]   ;;  %v5191_v63 = vld [vmem:[%s5924_s6 + $0x2d0] ss:$8 sps:$4 sm:$0xff]  }
  0x4b   : > { %3650 = vmatprep.subr.bf16.mxu1 %v5114_v0  ;;  %v5194_v0 = vld [vmem:[%s5924_s6 + $0x3d0] ss:$8 sps:$4 sm:$0xff]  }
  0x4d   : > { %3610 = vmatpush2.bf16.msra.mxu0 %v5116_v3  ;;  %v5197_v3 = vld [vmem:[%s5924_s6 + $0x2c0] ss:$8 sps:$4 sm:$0xff]  }
  0x4e   : > { %3651 = vmatpush2.bf16.msra.mxu1 %v5117_v4  ;;  %3611 = vmatprep.subr.bf16.mxu0 %v5118_v5  ;;  %v5200_v4 = vld [vmem:[%s5924_s6 + $0x3c0] ss:$8 sps:$4 sm:$0xff]   ;;  %v5205_v5 = vld [vmem:[%s5924_s6 + $0x2b4] ss:$8 sps:$4 sm:$0xff]  }
  0x4f   : > { %3652 = vmatprep.subr.bf16.mxu1 %v5120_v6  ;;  %v5208_v6 = vld [vmem:[%s5924_s6 + $0x3b4] ss:$8 sps:$4 sm:$0xff]  }
  0x51   : > { %3612 = vmatpush2.bf16.msra.mxu0 %v5122_v8  ;;  %v5203_v8 = vld [vmem:[%s5924_s6 + $0x2b0] ss:$8 sps:$4 sm:$0xff]  }
  0x52   : > { %3653 = vmatpush2.bf16.msra.mxu1 %v5123_v9  ;;  %3613 = vmatprep.subr.bf16.mxu0 %v5124_v10  ;;  %v5206_v9 = vld [vmem:[%s5924_s6 + $0x3b0] ss:$8 sps:$4 sm:$0xff]   ;;  %v5211_v10 = vld [vmem:[%s5924_s6 + $0x2a4] ss:$8 sps:$4 sm:$0xff]  }
  0x53   : > { %3654 = vmatprep.subr.bf16.mxu1 %v5126_v11  ;;  %v5214_v11 = vld [vmem:[%s5924_s6 + $0x3a4] ss:$8 sps:$4 sm:$0xff]  }
  0x55   : > { %3614 = vmatpush2.bf16.msra.mxu0 %v5128_v13  ;;  %v5212_v13 = vld [vmem:[%s5924_s6 + $0x3a0] ss:$8 sps:$4 sm:$0xff]  }
  0x56   : > { %3655 = vmatpush2.bf16.msra.mxu1 %v5129_v15  ;;  %3665 = vmatprep.subr.bf16.mxu0 %v5133_v16  ;;  %v5220_v15 = vld [vmem:[%s5924_s6 + $0x394] ss:$8 sps:$4 sm:$0xff]   ;;  %v5215_v16 = vld [vmem:[%s5924_s6 + $0x290] ss:$8 sps:$4 sm:$0xff]  }
  0x57   : > { %3706 = vmatprep.subr.bf16.mxu1 %v5136_v17  ;;  %v5218_v17 = vld [vmem:[%s5924_s6 + $0x390] ss:$8 sps:$4 sm:$0xff]  }
  0x58   : > { %3616 = vmatmul.mubr.bf16.vlgmr.msra.gmra.mxu0 %v818_v14  ;;  %v5217_v14 = vld [vmem:[%s5924_s6 + $0x294] ss:$8 sps:$4 sm:$0xff]  }
  0x59   : > { %3657 = vmatmul.mubr.bf16.vlgmr.msra.gmra.mxu1 %v840_v19  ;;  %3666 = vmatpush1.bf16.msra.mxu0 %v5131_v20  ;;  %v5226_v19 = vld [vmem:[%s5924_s6 + $0x384] ss:$8 sps:$4 sm:$0xff]   ;;  %v5221_v20 = vld [vmem:[%s5924_s6 + $0x280] ss:$8 sps:$4 sm:$0xff]  }
  0x5a   : > { %3707 = vmatpush1.bf16.msra.mxu1 %v5134_v21  ;;  %3667 = vmatprep.subr.bf16.mxu0 %v5139_v22  ;;  %v825_v21 = vrot.slane %v5994_v7, %v5974_v50  ;;  %v5224_v22 = vld [vmem:[%s5924_s6 + $0x380] ss:$8 sps:$4 sm:$0xff]   ;;  %v5235_v7 = vld [vmem:[%s5924_s6 + $0x464] ss:$8 sps:$4 sm:$0xff]  }
  0x5b   : > { %3708 = vmatprep.subr.bf16.mxu1 %v5142_v23  ;;  %3697 = vmatprep.mubr.bf16.mxu0 %v839_v18  ;;  %v5223_v18 = vld [vmem:[%s5924_s6 + $0x284] ss:$8 sps:$4 sm:$0xff]   ;;  %v5229_v23 = vld [vmem:[%s5924_s6 + $0x474] ss:$8 sps:$4 sm:$0xff]  }
  0x5c   : > { %3738 = vmatprep.mubr.bf16.mxu1 %v843_v24  ;;  %v5232_v24 = vld [vmem:[%s5924_s6 + $0x574] ss:$8 sps:$4 sm:$0xff]  }
  0x5d   : > { %3668 = vmatpush1.bf16.msra.mxu0 %v5137_v25  ;;  %v841_v25 = vcombine.high %v825_v21, %v825_v21 }
  0x5e   : > { %3709 = vmatpush1.bf16.msra.mxu1 %v5140_v26  ;;  %3669 = vmatprep.subr.bf16.mxu0 %v5145_v27  ;;  %v5227_v26 = vld [vmem:[%s5924_s6 + $0x470] ss:$8 sps:$4 sm:$0xff]  }
  0x5f   : > { %3710 = vmatprep.subr.bf16.mxu1 %v5148_v28  ;;  %v5230_v27 = vld [vmem:[%s5924_s6 + $0x570] ss:$8 sps:$4 sm:$0xff]   ;;  %v6077_v28 = vld [vmem:[%s5919_s27 + $0x8] sm:$0xff] }
  0x61   : > { %3670 = vmatpush1.bf16.msra.mxu0 %v5143_v29  ;;  %v5238_v29 = vld [vmem:[%s5924_s6 + $0x564] ss:$8 sps:$4 sm:$0xff]  }
  0x62   : > { %3711 = vmatpush1.bf16.msra.mxu1 %v5146_v30  ;;  %3671 = vmatprep.subr.bf16.mxu0 %v5151_v31  ;;  %v6083_v30 = vrot.slane %v6077_v28, %v5974_v50 }
  0x63   : > { %3712 = vmatprep.subr.bf16.mxu1 %v5154_v32  ;;  %v5233_v32 = vld [vmem:[%s5924_s6 + $0x460] ss:$8 sps:$4 sm:$0xff]  }
  0x64   : > { %v859_v31 = vcombine.high %v6083_v30, %v6083_v30 }
  0x65   : > { %3672 = vmatpush1.bf16.msra.mxu0 %v5149_v33  ;;  %v5236_v33 = vld [vmem:[%s5924_s6 + $0x560] ss:$8 sps:$4 sm:$0xff]  }
  0x66   : > { %3713 = vmatpush1.bf16.msra.mxu1 %v5152_v34  ;;  %3673 = vmatprep.subr.bf16.mxu0 %v5157_v35  ;;  %v5241_v34 = vld [vmem:[%s5924_s6 + $0x454] ss:$8 sps:$4 sm:$0xff]  }
  0x67   : > { %3714 = vmatprep.subr.bf16.mxu1 %v5160_v36  ;;  %v5244_v35 = vld [vmem:[%s5924_s6 + $0x554] ss:$8 sps:$4 sm:$0xff]   ;;  %v881_v36 = vrot.slane %v859_v31, %v5974_v50 }
  0x69   : > { %3674 = vmatpush1.bf16.msra.mxu0 %v5155_v37  ;;  %v891_v37 = vcombine.high %v881_v36, %v881_v36 }
  0x6a   : > { %3715 = vmatpush1.bf16.msra.mxu1 %v5158_v38  ;;  %3675 = vmatprep.subr.bf16.mxu0 %v5163_v39  ;;  %v5239_v38 = vld [vmem:[%s5924_s6 + $0x450] ss:$8 sps:$4 sm:$0xff]  }
  0x6b   : > { %3716 = vmatprep.subr.bf16.mxu1 %v5166_v40  ;;  %v5242_v39 = vld [vmem:[%s5924_s6 + $0x550] ss:$8 sps:$4 sm:$0xff]   ;;  %v5247_v40 = vld [vmem:[%s5924_s6 + $0x444] ss:$8 sps:$4 sm:$0xff]  }
  0x6d   : > { %3676 = vmatpush1.bf16.msra.mxu0 %v5161_v41  ;;  %v5250_v41 = vld [vmem:[%s5924_s6 + $0x544] ss:$8 sps:$4 sm:$0xff]  }
  0x6e   : > { %3717 = vmatpush1.bf16.msra.mxu1 %v5164_v42  ;;  %3677 = vmatprep.subr.bf16.mxu0 %v5169_v43  ;;  %v5245_v42 = vld [vmem:[%s5924_s6 + $0x440] ss:$8 sps:$4 sm:$0xff]  }
  0x6f   : > { %3718 = vmatprep.subr.bf16.mxu1 %v5172_v45  ;;  %v5248_v43 = vld [vmem:[%s5924_s6 + $0x540] ss:$8 sps:$4 sm:$0xff]   ;;  %v5253_v45 = vld [vmem:[%s5924_s6 + $0x434] ss:$8 sps:$4 sm:$0xff]  }
  0x71   : > { %3678 = vmatpush1.bf16.msra.mxu0 %v5167_v46  ;;  %v5256_v46 = vld [vmem:[%s5924_s6 + $0x534] ss:$8 sps:$4 sm:$0xff]  }
  0x72   : > { %3719 = vmatpush1.bf16.msra.mxu1 %v5170_v47  ;;  %3679 = vmatprep.subr.bf16.mxu0 %v5175_v48  ;;  %v5251_v47 = vld [vmem:[%s5924_s6 + $0x430] ss:$8 sps:$4 sm:$0xff]  }
  0x73   : > { %3720 = vmatprep.subr.bf16.mxu1 %v5178_v49  ;;  %v5254_v48 = vld [vmem:[%s5924_s6 + $0x530] ss:$8 sps:$4 sm:$0xff]   ;;  %v5259_v49 = vld [vmem:[%s5924_s6 + $0x424] ss:$8 sps:$4 sm:$0xff]  }
  0x75   : > { %3680 = vmatpush1.bf16.msra.mxu0 %v5173_v51  ;;  %v5262_v51 = vld [vmem:[%s5924_s6 + $0x524] ss:$8 sps:$4 sm:$0xff]  }
  0x76   : > { %3721 = vmatpush1.bf16.msra.mxu1 %v5176_v52  ;;  %3681 = vmatprep.subr.bf16.mxu0 %v5181_v53  ;;  %v5257_v52 = vld [vmem:[%s5924_s6 + $0x420] ss:$8 sps:$4 sm:$0xff]  }
  0x77   : > { %3722 = vmatprep.subr.bf16.mxu1 %v5184_v54  ;;  %v5260_v53 = vld [vmem:[%s5924_s6 + $0x520] ss:$8 sps:$4 sm:$0xff]   ;;  %v5265_v54 = vld [vmem:[%s5924_s6 + $0x414] ss:$8 sps:$4 sm:$0xff]  }
  0x79   : > { %3682 = vmatpush2.bf16.msra.mxu0 %v5179_v55  ;;  %v5268_v55 = vld [vmem:[%s5924_s6 + $0x514] ss:$8 sps:$4 sm:$0xff]  }
  0x7a   : > { %3723 = vmatpush2.bf16.msra.mxu1 %v5182_v56  ;;  %3683 = vmatprep.subr.bf16.mxu0 %v5187_v57  ;;  %v5263_v56 = vld [vmem:[%s5924_s6 + $0x410] ss:$8 sps:$4 sm:$0xff]  }
  0x7b   : > { %3724 = vmatprep.subr.bf16.mxu1 %v5190_v58  ;;  %v5266_v57 = vld [vmem:[%s5924_s6 + $0x510] ss:$8 sps:$4 sm:$0xff]   ;;  %v5271_v58 = vld [vmem:[%s5924_s6 + $0x404] ss:$8 sps:$4 sm:$0xff]  }
  0x7d   : > { %3684 = vmatpush2.bf16.msra.mxu0 %v5185_v59  ;;  %v5274_v59 = vld [vmem:[%s5924_s6 + $0x504] ss:$8 sps:$4 sm:$0xff]  }
  0x7e   : > { %3725 = vmatpush2.bf16.msra.mxu1 %v5188_v60  ;;  %3685 = vmatprep.subr.bf16.mxu0 %v5193_v61  ;;  %v5269_v60 = vld [vmem:[%s5924_s6 + $0x400] ss:$8 sps:$4 sm:$0xff]  }
  0x7f   : > { %3726 = vmatprep.subr.bf16.mxu1 %v5196_v62  ;;  %v5272_v61 = vld [vmem:[%s5924_s6 + $0x500] ss:$8 sps:$4 sm:$0xff]   ;;  %v5277_v62 = vld [vmem:[%s5924_s6 + $0x4f4] ss:$8 sps:$4 sm:$0xff]  }
  0x81   : > { %3686 = vmatpush2.bf16.msra.mxu0 %v5191_v63  ;;  %v5280_v63 = vld [vmem:[%s5924_s6 + $0x5f4] ss:$8 sps:$4 sm:$0xff]  }
  0x82   : > { %3727 = vmatpush2.bf16.msra.mxu1 %v5194_v0  ;;  %3687 = vmatprep.subr.bf16.mxu0 %v5199_v1  ;;  %v5275_v0 = vld [vmem:[%s5924_s6 + $0x4f0] ss:$8 sps:$4 sm:$0xff]  }
  0x83   : > { %3728 = vmatprep.subr.bf16.mxu1 %v5202_v2  ;;  %v5278_v1 = vld [vmem:[%s5924_s6 + $0x5f0] ss:$8 sps:$4 sm:$0xff]   ;;  %v5283_v2 = vld [vmem:[%s5924_s6 + $0x4e4] ss:$8 sps:$4 sm:$0xff]  }
  0x85   : > { %3688 = vmatpush2.bf16.msra.mxu0 %v5197_v3  ;;  %v5286_v3 = vld [vmem:[%s5924_s6 + $0x5e4] ss:$8 sps:$4 sm:$0xff]  }
  0x86   : > { %3729 = vmatpush2.bf16.msra.mxu1 %v5200_v4  ;;  %3689 = vmatprep.subr.bf16.mxu0 %v5205_v5  ;;  %v5281_v4 = vld [vmem:[%s5924_s6 + $0x4e0] ss:$8 sps:$4 sm:$0xff]  }
  0x87   : > { %3730 = vmatprep.subr.bf16.mxu1 %v5208_v6  ;;  %v5284_v5 = vld [vmem:[%s5924_s6 + $0x5e0] ss:$8 sps:$4 sm:$0xff]   ;;  %v5289_v6 = vld [vmem:[%s5924_s6 + $0x4d4] ss:$8 sps:$4 sm:$0xff]  }
  0x89   : > { %3690 = vmatpush2.bf16.msra.mxu0 %v5203_v8  ;;  %v5292_v8 = vld [vmem:[%s5924_s6 + $0x5d4] ss:$8 sps:$4 sm:$0xff]  }
  0x8a   : > { %3731 = vmatpush2.bf16.msra.mxu1 %v5206_v9  ;;  %3691 = vmatprep.subr.bf16.mxu0 %v5211_v10  ;;  %v5287_v9 = vld [vmem:[%s5924_s6 + $0x4d0] ss:$8 sps:$4 sm:$0xff]  }
  0x8b   : > { %3732 = vmatprep.subr.bf16.mxu1 %v5214_v11  ;;  %v5290_v10 = vld [vmem:[%s5924_s6 + $0x5d0] ss:$8 sps:$4 sm:$0xff]   ;;  %v5295_v11 = vld [vmem:[%s5924_s6 + $0x4c4] ss:$8 sps:$4 sm:$0xff]  }
  0x8d   : > { %3692 = vmatpush2.bf16.msra.mxu0 %v5209_v12  ;;  %v5298_v12 = vld [vmem:[%s5924_s6 + $0x5c4] ss:$8 sps:$4 sm:$0xff]  }
  0x8e   : > { %3733 = vmatpush2.bf16.msra.mxu1 %v5212_v13  ;;  %3693 = vmatprep.subr.bf16.mxu0 %v5217_v14  ;;  %v5293_v13 = vld [vmem:[%s5924_s6 + $0x4c0] ss:$8 sps:$4 sm:$0xff]  }
  0x8f   : > { %3734 = vmatprep.subr.bf16.mxu1 %v5220_v15  ;;  %v5296_v14 = vld [vmem:[%s5924_s6 + $0x5c0] ss:$8 sps:$4 sm:$0xff]   ;;  %v5301_v15 = vld [vmem:[%s5924_s6 + $0x4b4] ss:$8 sps:$4 sm:$0xff]  }
  0x91   : > { %3694 = vmatpush2.bf16.msra.mxu0 %v5215_v16  ;;  %v5304_v16 = vld [vmem:[%s5924_s6 + $0x5b4] ss:$8 sps:$4 sm:$0xff]  }
  0x92   : > { %3735 = vmatpush2.bf16.msra.mxu1 %v5218_v17  ;;  %3695 = vmatprep.subr.bf16.mxu0 %v5223_v18  ;;  %v5299_v17 = vld [vmem:[%s5924_s6 + $0x4b0] ss:$8 sps:$4 sm:$0xff]  }
  0x93   : > { %3736 = vmatprep.subr.bf16.mxu1 %v5226_v19  ;;  %v5302_v18 = vld [vmem:[%s5924_s6 + $0x5b0] ss:$8 sps:$4 sm:$0xff]   ;;  %v5307_v19 = vld [vmem:[%s5924_s6 + $0x4a4] ss:$8 sps:$4 sm:$0xff]  }
  0x95   : > { %3696 = vmatpush2.bf16.msra.mxu0 %v5221_v20  ;;  %v5310_v20 = vld [vmem:[%s5924_s6 + $0x5a4] ss:$8 sps:$4 sm:$0xff]  }
  0x96   : > { %3737 = vmatpush2.bf16.msra.mxu1 %v5224_v22  ;;  %3747 = vmatprep.subr.bf16.mxu0 %v5229_v23  ;;  %v5305_v22 = vld [vmem:[%s5924_s6 + $0x4a0] ss:$8 sps:$4 sm:$0xff]  }
  0x97   : > { %3788 = vmatprep.subr.bf16.mxu1 %v5232_v24  ;;  %v5308_v23 = vld [vmem:[%s5924_s6 + $0x5a0] ss:$8 sps:$4 sm:$0xff]   ;;  %v5313_v24 = vld [vmem:[%s5924_s6 + $0x494] ss:$8 sps:$4 sm:$0xff]  }
  0x98   : > { %3698 = vmatmul.mubr.bf16.vlgmr.msra.gmra.mxu0 %v825_v21  ;;  %v844_v21 = vcombine.high %v6077_v28, %v6077_v28  ;;  %v5314_v28 = vld [vmem:[%s5924_s6 + $0x590] ss:$8 sps:$4 sm:$0xff]  }
  0x99   : > { %3739 = vmatmul.mubr.bf16.vlgmr.msra.gmra.mxu1 %v841_v25  ;;  %3748 = vmatpush1.bf16.msra.mxu0 %v5227_v26  ;;  %v5316_v25 = vld [vmem:[%s5924_s6 + $0x594] ss:$8 sps:$4 sm:$0xff]  }
  0x9a   : > { %3789 = vmatpush1.bf16.msra.mxu1 %v5230_v27  ;;  %3749 = vmatprep.subr.bf16.mxu0 %v5235_v7  ;;  %v6143_v26 = vrot.slane %v844_v21, %v5974_v50  ;;  %v5311_v27 = vld [vmem:[%s5924_s6 + $0x490] ss:$8 sps:$4 sm:$0xff]   ;;  %v5319_v7 = vld [vmem:[%s5924_s6 + $0x484] ss:$8 sps:$4 sm:$0xff]  }
  0x9b   : > { %3790 = vmatprep.subr.bf16.mxu1 %v5238_v29  ;;  %3779 = vmatprep.mubr.bf16.mxu0 %v881_v36  ;;  %v5322_v29 = vld [vmem:[%s5924_s6 + $0x584] ss:$8 sps:$4 sm:$0xff]   ;;  %v5328_v36 = vld [vmem:[%s5924_s6 + $0x774] ss:$8 sps:$4 sm:$0xff]  }
  0x9c   : > { %3820 = vmatprep.mubr.bf16.mxu1 %v891_v37  ;;  %v860_v31 = vcombine.high %v6143_v26, %v6143_v26  ;;  %v5394_v21 = vld [vmem:[%s5924_s6 + $0x7c4] ss:$8 sps:$4 sm:$0xff]  }
  0x9d   : > { %3750 = vmatpush1.bf16.msra.mxu0 %v5233_v32  ;;  %v867_v32 = vrot.slane %v6083_v30, %v5974_v50  ;;  %v5326_v30 = vld [vmem:[%s5924_s6 + $0x770] ss:$8 sps:$4 sm:$0xff]  }
  0x9e   : > { %3791 = vmatpush1.bf16.msra.mxu1 %v5236_v33  ;;  %3751 = vmatprep.subr.bf16.mxu0 %v5241_v34  ;;  %v5317_v33 = vld [vmem:[%s5924_s6 + $0x480] ss:$8 sps:$4 sm:$0xff]   ;;  %v888_v37 = vrot.slane %v860_v31, %v5974_v50 }
  0x9f   : > { %3792 = vmatprep.subr.bf16.mxu1 %v5244_v35  ;;  %v5320_v34 = vld [vmem:[%s5924_s6 + $0x580] ss:$8 sps:$4 sm:$0xff]   ;;  %v5325_v35 = vld [vmem:[%s5924_s6 + $0x674] ss:$8 sps:$4 sm:$0xff]  }
  0xa0   : > { %v5401_v31 = vld [vmem:[%s5924_s6 + $0x6a0] ss:$8 sps:$4 sm:$0xff]  }
  0xa1   : > { %3752 = vmatpush1.bf16.msra.mxu0 %v5239_v38  ;;  %v889_v38 = vcombine.high %v867_v32, %v867_v32 }
  0xa2   : > { %3793 = vmatpush1.bf16.msra.mxu1 %v5242_v39  ;;  %3753 = vmatprep.subr.bf16.mxu0 %v5247_v40  ;;  %v5323_v39 = vld [vmem:[%s5924_s6 + $0x670] ss:$8 sps:$4 sm:$0xff]   ;;  %v5331_v40 = vld [vmem:[%s5924_s6 + $0x664] ss:$8 sps:$4 sm:$0xff]  }
  0xa3   : > { %3794 = vmatprep.subr.bf16.mxu1 %v5250_v41  ;;  %v5334_v41 = vld [vmem:[%s5924_s6 + $0x764] ss:$8 sps:$4 sm:$0xff]  }
  0xa5   : > { %3754 = vmatpush1.bf16.msra.mxu0 %v5245_v42  ;;  %v892_v42 = vcombine.high %v888_v37, %v888_v37 }
  0xa6   : > { %3795 = vmatpush1.bf16.msra.mxu1 %v5248_v43  ;;  %3755 = vmatprep.subr.bf16.mxu0 %v5253_v45  ;;  %v5329_v43 = vld [vmem:[%s5924_s6 + $0x660] ss:$8 sps:$4 sm:$0xff]  }
  0xa7   : > { %3796 = vmatprep.subr.bf16.mxu1 %v5256_v46  ;;  %v5332_v45 = vld [vmem:[%s5924_s6 + $0x760] ss:$8 sps:$4 sm:$0xff]   ;;  %v5337_v46 = vld [vmem:[%s5924_s6 + $0x654] ss:$8 sps:$4 sm:$0xff]  }
  0xa9   : > { %3756 = vmatpush1.bf16.msra.mxu0 %v5251_v47  ;;  %v5340_v47 = vld [vmem:[%s5924_s6 + $0x754] ss:$8 sps:$4 sm:$0xff]  }
  0xaa   : > { %3797 = vmatpush1.bf16.msra.mxu1 %v5254_v48  ;;  %3757 = vmatprep.subr.bf16.mxu0 %v5259_v49  ;;  %v5335_v48 = vld [vmem:[%s5924_s6 + $0x650] ss:$8 sps:$4 sm:$0xff]  }
  0xab   : > { %3798 = vmatprep.subr.bf16.mxu1 %v5262_v51  ;;  %v5338_v49 = vld [vmem:[%s5924_s6 + $0x750] ss:$8 sps:$4 sm:$0xff]   ;;  %v5343_v51 = vld [vmem:[%s5924_s6 + $0x644] ss:$8 sps:$4 sm:$0xff]  }
  0xad   : > { %3758 = vmatpush1.bf16.msra.mxu0 %v5257_v52  ;;  %v5346_v52 = vld [vmem:[%s5924_s6 + $0x744] ss:$8 sps:$4 sm:$0xff]  }
  0xae   : > { %3799 = vmatpush1.bf16.msra.mxu1 %v5260_v53  ;;  %3759 = vmatprep.subr.bf16.mxu0 %v5265_v54  ;;  %v5341_v53 = vld [vmem:[%s5924_s6 + $0x640] ss:$8 sps:$4 sm:$0xff]  }
  0xaf   : > { %3800 = vmatprep.subr.bf16.mxu1 %v5268_v55  ;;  %v5344_v54 = vld [vmem:[%s5924_s6 + $0x740] ss:$8 sps:$4 sm:$0xff]   ;;  %v5349_v55 = vld [vmem:[%s5924_s6 + $0x634] ss:$8 sps:$4 sm:$0xff]  }
  0xb1   : > { %3760 = vmatpush1.bf16.msra.mxu0 %v5263_v56  ;;  %v5352_v56 = vld [vmem:[%s5924_s6 + $0x734] ss:$8 sps:$4 sm:$0xff]  }
  0xb2   : > { %3801 = vmatpush1.bf16.msra.mxu1 %v5266_v57  ;;  %3761 = vmatprep.subr.bf16.mxu0 %v5271_v58  ;;  %v5347_v57 = vld [vmem:[%s5924_s6 + $0x630] ss:$8 sps:$4 sm:$0xff]  }
  0xb3   : > { %3802 = vmatprep.subr.bf16.mxu1 %v5274_v59  ;;  %v5350_v58 = vld [vmem:[%s5924_s6 + $0x730] ss:$8 sps:$4 sm:$0xff]   ;;  %v5355_v59 = vld [vmem:[%s5924_s6 + $0x624] ss:$8 sps:$4 sm:$0xff]  }
  0xb5   : > { %3762 = vmatpush1.bf16.msra.mxu0 %v5269_v60  ;;  %v5358_v60 = vld [vmem:[%s5924_s6 + $0x724] ss:$8 sps:$4 sm:$0xff]  }
  0xb6   : > { %3803 = vmatpush1.bf16.msra.mxu1 %v5272_v61  ;;  %3763 = vmatprep.subr.bf16.mxu0 %v5277_v62  ;;  %v5353_v61 = vld [vmem:[%s5924_s6 + $0x620] ss:$8 sps:$4 sm:$0xff]  }
  0xb7   : > { %3804 = vmatprep.subr.bf16.mxu1 %v5280_v63  ;;  %v5356_v62 = vld [vmem:[%s5924_s6 + $0x720] ss:$8 sps:$4 sm:$0xff]   ;;  %v5361_v63 = vld [vmem:[%s5924_s6 + $0x614] ss:$8 sps:$4 sm:$0xff]  }
  0xb9   : > { %3764 = vmatpush2.bf16.msra.mxu0 %v5275_v0  ;;  %v5364_v0 = vld [vmem:[%s5924_s6 + $0x714] ss:$8 sps:$4 sm:$0xff]  }
  0xba   : > { %3805 = vmatpush2.bf16.msra.mxu1 %v5278_v1  ;;  %3765 = vmatprep.subr.bf16.mxu0 %v5283_v2  ;;  %v5359_v1 = vld [vmem:[%s5924_s6 + $0x610] ss:$8 sps:$4 sm:$0xff]  }
  0xbb   : > { %3806 = vmatprep.subr.bf16.mxu1 %v5286_v3  ;;  %v5362_v2 = vld [vmem:[%s5924_s6 + $0x710] ss:$8 sps:$4 sm:$0xff]   ;;  %v5367_v3 = vld [vmem:[%s5924_s6 + $0x604] ss:$8 sps:$4 sm:$0xff]  }
  0xbd   : > { %3766 = vmatpush2.bf16.msra.mxu0 %v5281_v4  ;;  %v5370_v4 = vld [vmem:[%s5924_s6 + $0x704] ss:$8 sps:$4 sm:$0xff]  }
  0xbe   : > { %3807 = vmatpush2.bf16.msra.mxu1 %v5284_v5  ;;  %3767 = vmatprep.subr.bf16.mxu0 %v5289_v6  ;;  %v5365_v5 = vld [vmem:[%s5924_s6 + $0x600] ss:$8 sps:$4 sm:$0xff]  }
  0xbf   : > { %3808 = vmatprep.subr.bf16.mxu1 %v5292_v8  ;;  %v5368_v6 = vld [vmem:[%s5924_s6 + $0x700] ss:$8 sps:$4 sm:$0xff]   ;;  %v5373_v8 = vld [vmem:[%s5924_s6 + $0x6f4] ss:$8 sps:$4 sm:$0xff]  }
  0xc1   : > { %3768 = vmatpush2.bf16.msra.mxu0 %v5287_v9  ;;  %v5376_v9 = vld [vmem:[%s5924_s6 + $0x7f4] ss:$8 sps:$4 sm:$0xff]  }
  0xc2   : > { %3809 = vmatpush2.bf16.msra.mxu1 %v5290_v10  ;;  %3769 = vmatprep.subr.bf16.mxu0 %v5295_v11  ;;  %v5371_v10 = vld [vmem:[%s5924_s6 + $0x6f0] ss:$8 sps:$4 sm:$0xff]  }
  0xc3   : > { %3810 = vmatprep.subr.bf16.mxu1 %v5298_v12  ;;  %v5374_v11 = vld [vmem:[%s5924_s6 + $0x7f0] ss:$8 sps:$4 sm:$0xff]   ;;  %v5379_v12 = vld [vmem:[%s5924_s6 + $0x6e4] ss:$8 sps:$4 sm:$0xff]  }
  0xc5   : > { %3770 = vmatpush2.bf16.msra.mxu0 %v5293_v13  ;;  %v5382_v13 = vld [vmem:[%s5924_s6 + $0x7e4] ss:$8 sps:$4 sm:$0xff]  }
  0xc6   : > { %3811 = vmatpush2.bf16.msra.mxu1 %v5296_v14  ;;  %3771 = vmatprep.subr.bf16.mxu0 %v5301_v15  ;;  %v5377_v14 = vld [vmem:[%s5924_s6 + $0x6e0] ss:$8 sps:$4 sm:$0xff]  }
  0xc7   : > { %3812 = vmatprep.subr.bf16.mxu1 %v5304_v16  ;;  %v5380_v15 = vld [vmem:[%s5924_s6 + $0x7e0] ss:$8 sps:$4 sm:$0xff]   ;;  %v5385_v16 = vld [vmem:[%s5924_s6 + $0x6d4] ss:$8 sps:$4 sm:$0xff]  }
  0xc9   : > { %3772 = vmatpush2.bf16.msra.mxu0 %v5299_v17  ;;  %v5388_v17 = vld [vmem:[%s5924_s6 + $0x7d4] ss:$8 sps:$4 sm:$0xff]  }
  0xca   : > { %3813 = vmatpush2.bf16.msra.mxu1 %v5302_v18  ;;  %3773 = vmatprep.subr.bf16.mxu0 %v5307_v19  ;;  %v5383_v18 = vld [vmem:[%s5924_s6 + $0x6d0] ss:$8 sps:$4 sm:$0xff]  }
  0xcb   : > { %3814 = vmatprep.subr.bf16.mxu1 %v5310_v20  ;;  %v5386_v19 = vld [vmem:[%s5924_s6 + $0x7d0] ss:$8 sps:$4 sm:$0xff]   ;;  %v5391_v20 = vld [vmem:[%s5924_s6 + $0x6c4] ss:$8 sps:$4 sm:$0xff]  }
  0xcd   : > { %3774 = vmatpush2.bf16.msra.mxu0 %v5305_v22  ;;  %v5389_v22 = vld [vmem:[%s5924_s6 + $0x6c0] ss:$8 sps:$4 sm:$0xff]  }
  0xce   : > { %3815 = vmatpush2.bf16.msra.mxu1 %v5308_v23  ;;  %3775 = vmatprep.subr.bf16.mxu0 %v5313_v24  ;;  %v5392_v23 = vld [vmem:[%s5924_s6 + $0x7c0] ss:$8 sps:$4 sm:$0xff]   ;;  %v5397_v24 = vld [vmem:[%s5924_s6 + $0x6b4] ss:$8 sps:$4 sm:$0xff]  }
  0xcf   : > { %3816 = vmatprep.subr.bf16.mxu1 %v5316_v25  ;;  %v5400_v25 = vld [vmem:[%s5924_s6 + $0x7b4] ss:$8 sps:$4 sm:$0xff]  }
  0xd1   : > { %3776 = vmatpush2.bf16.msra.mxu0 %v5311_v27  ;;  %v5395_v27 = vld [vmem:[%s5924_s6 + $0x6b0] ss:$8 sps:$4 sm:$0xff]  }
  0xd2   : > { %3817 = vmatpush2.bf16.msra.mxu1 %v5314_v28  ;;  %3777 = vmatprep.subr.bf16.mxu0 %v5319_v7  ;;  %v5398_v28 = vld [vmem:[%s5924_s6 + $0x7b0] ss:$8 sps:$4 sm:$0xff]   ;;  %v5403_v7 = vld [vmem:[%s5924_s6 + $0x6a4] ss:$8 sps:$4 sm:$0xff]  }
  0xd3   : > { %3818 = vmatprep.subr.bf16.mxu1 %v5322_v29  ;;  %v5406_v29 = vld [vmem:[%s5924_s6 + $0x7a4] ss:$8 sps:$4 sm:$0xff]  }
  0xd5   : > { %3778 = vmatpush2.bf16.msra.mxu0 %v5317_v33  ;;  %v5404_v33 = vld [vmem:[%s5924_s6 + $0x7a0] ss:$8 sps:$4 sm:$0xff]  }
  0xd6   : > { %3819 = vmatpush2.bf16.msra.mxu1 %v5320_v34  ;;  %3829 = vmatprep.subr.bf16.mxu0 %v5325_v35  ;;  %v5409_v34 = vld [vmem:[%s5924_s6 + $0x694] ss:$8 sps:$4 sm:$0xff]  }
  0xd7   : > { %3870 = vmatprep.subr.bf16.mxu1 %v5328_v36  ;;  %v5412_v35 = vld [vmem:[%s5924_s6 + $0x794] ss:$8 sps:$4 sm:$0xff]  }
  0xd8   : > { %3780 = vmatmul.mubr.bf16.vlgmr.msra.gmra.mxu0 %v867_v32  ;;  %v6212_v32 = vld [vmem:[%s5919_s27 + $0x10] sm:$0xff] }
  0xd9   : > { %3821 = vmatmul.mubr.bf16.vlgmr.msra.gmra.mxu1 %v889_v38  ;;  %3830 = vmatpush1.bf16.msra.mxu0 %v5323_v39  ;;  %v6219_v36 = vrot.slane %v6212_v32, %v5974_v50  ;;  %v5410_v38 = vld [vmem:[%s5924_s6 + $0x790] ss:$8 sps:$4 sm:$0xff]   ;;  %v5415_v39 = vld [vmem:[%s5924_s6 + $0x684] ss:$8 sps:$4 sm:$0xff]  }
  0xda   : > { %3871 = vmatpush1.bf16.msra.mxu1 %v5326_v30  ;;  %3831 = vmatprep.subr.bf16.mxu0 %v5331_v40  ;;  %v5418_v30 = vld [vmem:[%s5924_s6 + $0x784] ss:$8 sps:$4 sm:$0xff]  }
  0xdb   : > { %3872 = vmatprep.subr.bf16.mxu1 %v5334_v41  ;;  %3861 = vmatprep.mubr.bf16.mxu0 %v888_v37  ;;  %v5407_v37 = vld [vmem:[%s5924_s6 + $0x690] ss:$8 sps:$4 sm:$0xff]   ;;  %v908_v40 = vcombine.high %v6219_v36, %v6219_v36  ;;  %v5413_v41 = vld [vmem:[%s5924_s6 + $0x680] ss:$8 sps:$4 sm:$0xff]  }
  0xdc   : > { %3902 = vmatprep.mubr.bf16.mxu1 %v892_v42  ;;  %v874_v42 = vrot.slane %v6143_v26, %v5974_v50  ;;  %v5431_v26 = vld [vmem:[%s5924_s6 + $0x964] ss:$8 sps:$4 sm:$0xff]  }
  0xdd   : > { %3832 = vmatpush1.bf16.msra.mxu0 %v5329_v43  ;;  %v5416_v43 = vld [vmem:[%s5924_s6 + $0x780] ss:$8 sps:$4 sm:$0xff]  }
  0xde   : > { %3873 = vmatpush1.bf16.msra.mxu1 %v5332_v45  ;;  %3833 = vmatprep.subr.bf16.mxu0 %v5337_v46  ;;  %v5422_v45 = vld [vmem:[%s5924_s6 + $0x874] ss:$8 sps:$4 sm:$0xff]  }
  0xdf   : > { %3874 = vmatprep.subr.bf16.mxu1 %v5340_v47  ;;  %v5425_v46 = vld [vmem:[%s5924_s6 + $0x974] ss:$8 sps:$4 sm:$0xff]   ;;  %v930_v47 = vrot.slane %v908_v40, %v5974_v50  ;;  %v5483_v40 = vld [vmem:[%s5924_s6 + $0x9d0] ss:$8 sps:$4 sm:$0xff]  }
  0xe1   : > { %3834 = vmatpush1.bf16.msra.mxu0 %v5335_v48  ;;  %v890_v48 = vcombine.high %v874_v42, %v874_v42 }
  0xe2   : > { %3875 = vmatpush1.bf16.msra.mxu1 %v5338_v49  ;;  %3835 = vmatprep.subr.bf16.mxu0 %v5343_v51  ;;  %v5420_v49 = vld [vmem:[%s5924_s6 + $0x870] ss:$8 sps:$4 sm:$0xff]  }
  0xe3   : > { %3876 = vmatprep.subr.bf16.mxu1 %v5346_v52  ;;  %v5423_v51 = vld [vmem:[%s5924_s6 + $0x970] ss:$8 sps:$4 sm:$0xff]   ;;  %v5428_v52 = vld [vmem:[%s5924_s6 + $0x864] ss:$8 sps:$4 sm:$0xff]  }
  0xe5   : > { %3836 = vmatpush1.bf16.msra.mxu0 %v5341_v53  ;;  %v940_v53 = vcombine.high %v930_v47, %v930_v47 }
  0xe6   : > { %3877 = vmatpush1.bf16.msra.mxu1 %v5344_v54  ;;  %3837 = vmatprep.subr.bf16.mxu0 %v5349_v55 }
  0xe7   : > { %3878 = vmatprep.subr.bf16.mxu1 %v5352_v56  ;;  %v5426_v56 = vld [vmem:[%s5924_s6 + $0x860] ss:$8 sps:$4 sm:$0xff]  }
  0xe9   : > { %3838 = vmatpush1.bf16.msra.mxu0 %v5347_v57  ;;  %v5429_v57 = vld [vmem:[%s5924_s6 + $0x960] ss:$8 sps:$4 sm:$0xff]  }
  0xea   : > { %3879 = vmatpush1.bf16.msra.mxu1 %v5350_v58  ;;  %3839 = vmatprep.subr.bf16.mxu0 %v5355_v59 }
  0xeb   : > { %3880 = vmatprep.subr.bf16.mxu1 %v5358_v60 }
  0xed   : > { %3840 = vmatpush1.bf16.msra.mxu0 %v5353_v61  ;;  %v5434_v61 = vld [vmem:[%s5924_s6 + $0x854] ss:$8 sps:$4 sm:$0xff]  }
  0xee   : > { %3881 = vmatpush1.bf16.msra.mxu1 %v5356_v62  ;;  %3841 = vmatprep.subr.bf16.mxu0 %v5361_v63  ;;  %v5437_v62 = vld [vmem:[%s5924_s6 + $0x954] ss:$8 sps:$4 sm:$0xff]  }
  0xef   : > { %3882 = vmatprep.subr.bf16.mxu1 %v5364_v0  ;;  %v5432_v0 = vld [vmem:[%s5924_s6 + $0x850] ss:$8 sps:$4 sm:$0xff]  }
  0xf1   : > { %3842 = vmatpush1.bf16.msra.mxu0 %v5359_v1  ;;  %v5435_v1 = vld [vmem:[%s5924_s6 + $0x950] ss:$8 sps:$4 sm:$0xff]  }
  0xf2   : > { %3883 = vmatpush1.bf16.msra.mxu1 %v5362_v2  ;;  %3843 = vmatprep.subr.bf16.mxu0 %v5367_v3 }
  0xf3   : > { %3884 = vmatprep.subr.bf16.mxu1 %v5370_v4 }
  0xf5   : > { %3844 = vmatpush1.bf16.msra.mxu0 %v5365_v5 }
  0xf6   : > { %3885 = vmatpush1.bf16.msra.mxu1 %v5368_v6  ;;  %3845 = vmatprep.subr.bf16.mxu0 %v5373_v8  ;;  %v5440_v6 = vld [vmem:[%s5924_s6 + $0x844] ss:$8 sps:$4 sm:$0xff]  }
  0xf7   : > { %3886 = vmatprep.subr.bf16.mxu1 %v5376_v9  ;;  %v5443_v8 = vld [vmem:[%s5924_s6 + $0x944] ss:$8 sps:$4 sm:$0xff]   ;;  %v5438_v9 = vld [vmem:[%s5924_s6 + $0x840] ss:$8 sps:$4 sm:$0xff]  }
  0xf9   : > { %3846 = vmatpush2.bf16.msra.mxu0 %v5371_v10  ;;  %v5441_v10 = vld [vmem:[%s5924_s6 + $0x940] ss:$8 sps:$4 sm:$0xff]  }
  0xfa   : > { %3887 = vmatpush2.bf16.msra.mxu1 %v5374_v11  ;;  %3847 = vmatprep.subr.bf16.mxu0 %v5379_v12  ;;  %v5446_v11 = vld [vmem:[%s5924_s6 + $0x834] ss:$8 sps:$4 sm:$0xff]  }
  0xfb   : > { %3888 = vmatprep.subr.bf16.mxu1 %v5382_v13  ;;  %v5449_v12 = vld [vmem:[%s5924_s6 + $0x934] ss:$8 sps:$4 sm:$0xff]   ;;  %v5444_v13 = vld [vmem:[%s5924_s6 + $0x830] ss:$8 sps:$4 sm:$0xff]  }
  0xfd   : > { %3848 = vmatpush2.bf16.msra.mxu0 %v5377_v14  ;;  %v5447_v14 = vld [vmem:[%s5924_s6 + $0x930] ss:$8 sps:$4 sm:$0xff]  }
  0xfe   : > { %3889 = vmatpush2.bf16.msra.mxu1 %v5380_v15  ;;  %3849 = vmatprep.subr.bf16.mxu0 %v5385_v16  ;;  %v5452_v15 = vld [vmem:[%s5924_s6 + $0x824] ss:$8 sps:$4 sm:$0xff]  }
  0xff   : > { %3890 = vmatprep.subr.bf16.mxu1 %v5388_v17  ;;  %v5455_v16 = vld [vmem:[%s5924_s6 + $0x924] ss:$8 sps:$4 sm:$0xff]   ;;  %v5450_v17 = vld [vmem:[%s5924_s6 + $0x820] ss:$8 sps:$4 sm:$0xff]  }
 0x101   : > { %3850 = vmatpush2.bf16.msra.mxu0 %v5383_v18  ;;  %v5453_v18 = vld [vmem:[%s5924_s6 + $0x920] ss:$8 sps:$4 sm:$0xff]  }
 0x102   : > { %3891 = vmatpush2.bf16.msra.mxu1 %v5386_v19  ;;  %3851 = vmatprep.subr.bf16.mxu0 %v5391_v20  ;;  %v5458_v19 = vld [vmem:[%s5924_s6 + $0x814] ss:$8 sps:$4 sm:$0xff]  }
 0x103   : > { %3892 = vmatprep.subr.bf16.mxu1 %v5394_v21  ;;  %v5461_v20 = vld [vmem:[%s5924_s6 + $0x914] ss:$8 sps:$4 sm:$0xff]   ;;  %v5456_v21 = vld [vmem:[%s5924_s6 + $0x810] ss:$8 sps:$4 sm:$0xff]  }
 0x105   : > { %3852 = vmatpush2.bf16.msra.mxu0 %v5389_v22  ;;  %v5459_v22 = vld [vmem:[%s5924_s6 + $0x910] ss:$8 sps:$4 sm:$0xff]  }
 0x106   : > { %3893 = vmatpush2.bf16.msra.mxu1 %v5392_v23  ;;  %3853 = vmatprep.subr.bf16.mxu0 %v5397_v24  ;;  %v5464_v23 = vld [vmem:[%s5924_s6 + $0x804] ss:$8 sps:$4 sm:$0xff]  }
 0x107   : > { %3894 = vmatprep.subr.bf16.mxu1 %v5400_v25  ;;  %v5467_v24 = vld [vmem:[%s5924_s6 + $0x904] ss:$8 sps:$4 sm:$0xff]   ;;  %v5462_v25 = vld [vmem:[%s5924_s6 + $0x800] ss:$8 sps:$4 sm:$0xff]  }
 0x109   : > { %3854 = vmatpush2.bf16.msra.mxu0 %v5395_v27  ;;  %v5465_v27 = vld [vmem:[%s5924_s6 + $0x900] ss:$8 sps:$4 sm:$0xff]  }
 0x10a   : > { %3895 = vmatpush2.bf16.msra.mxu1 %v5398_v28  ;;  %3855 = vmatprep.subr.bf16.mxu0 %v5403_v7  ;;  %v5470_v28 = vld [vmem:[%s5924_s6 + $0x8f4] ss:$8 sps:$4 sm:$0xff]  }
 0x10b   : > { %3896 = vmatprep.subr.bf16.mxu1 %v5406_v29  ;;  %v5473_v7 = vld [vmem:[%s5924_s6 + $0x9f4] ss:$8 sps:$4 sm:$0xff]   ;;  %v5468_v29 = vld [vmem:[%s5924_s6 + $0x8f0] ss:$8 sps:$4 sm:$0xff]  }
 0x10d   : > { %3856 = vmatpush2.bf16.msra.mxu0 %v5401_v31  ;;  %v5471_v31 = vld [vmem:[%s5924_s6 + $0x9f0] ss:$8 sps:$4 sm:$0xff]  }
 0x10e   : > { %3897 = vmatpush2.bf16.msra.mxu1 %v5404_v33  ;;  %3857 = vmatprep.subr.bf16.mxu0 %v5409_v34  ;;  %v5476_v33 = vld [vmem:[%s5924_s6 + $0x8e4] ss:$8 sps:$4 sm:$0xff]  }
 0x10f   : > { %3898 = vmatprep.subr.bf16.mxu1 %v5412_v35  ;;  %v5479_v34 = vld [vmem:[%s5924_s6 + $0x9e4] ss:$8 sps:$4 sm:$0xff]   ;;  %v5474_v35 = vld [vmem:[%s5924_s6 + $0x8e0] ss:$8 sps:$4 sm:$0xff]  }
 0x111   : > { %3858 = vmatpush2.bf16.msra.mxu0 %v5407_v37  ;;  %v5477_v37 = vld [vmem:[%s5924_s6 + $0x9e0] ss:$8 sps:$4 sm:$0xff]  }
 0x112   : > { %3899 = vmatpush2.bf16.msra.mxu1 %v5410_v38  ;;  %3859 = vmatprep.subr.bf16.mxu0 %v5415_v39  ;;  %v5482_v38 = vld [vmem:[%s5924_s6 + $0x8d4] ss:$8 sps:$4 sm:$0xff]  }
 0x113   : > { %3900 = vmatprep.subr.bf16.mxu1 %v5418_v30  ;;  %v5485_v39 = vld [vmem:[%s5924_s6 + $0x9d4] ss:$8 sps:$4 sm:$0xff]   ;;  %v5480_v30 = vld [vmem:[%s5924_s6 + $0x8d0] ss:$8 sps:$4 sm:$0xff]  }
 0x115   : > { %3860 = vmatpush2.bf16.msra.mxu0 %v5413_v41  ;;  %v5488_v41 = vld [vmem:[%s5924_s6 + $0x8c4] ss:$8 sps:$4 sm:$0xff]  }
 0x116   : > { %3901 = vmatpush2.bf16.msra.mxu1 %v5416_v43  ;;  %3911 = vmatprep.subr.bf16.mxu0 %v5422_v45  ;;  %v5486_v43 = vld [vmem:[%s5924_s6 + $0x8c0] ss:$8 sps:$4 sm:$0xff]  }
 0x117   : > { %3952 = vmatprep.subr.bf16.mxu1 %v5425_v46  ;;  %v5489_v45 = vld [vmem:[%s5924_s6 + $0x9c0] ss:$8 sps:$4 sm:$0xff]   ;;  %v5494_v46 = vld [vmem:[%s5924_s6 + $0x8b4] ss:$8 sps:$4 sm:$0xff]  }
 0x118   : > { %v3617_v54 = vpop.f32.mrf.mxu0  ;;  %3862 = vmatmul.mubr.bf16.vlgmr.msra.gmra.mxu0 %v874_v42  ;;  %v5491_v42 = vld [vmem:[%s5924_s6 + $0x9c4] ss:$8 sps:$4 sm:$0xff]  }
 0x119   : > { %v3658_v55 = vpop.f32.mrf.mxu1  ;;  %3903 = vmatmul.mubr.bf16.vlgmr.msra.gmra.mxu1 %v890_v48  ;;  %3912 = vmatpush1.bf16.msra.mxu0 %v5420_v49  ;;  %v5492_v48 = vld [vmem:[%s5924_s6 + $0x8b0] ss:$8 sps:$4 sm:$0xff]  }
 0x11a   : > { %v6240_v58 = vadd.f32 %v3658_v55, %v3617_v54  ;;  %3953 = vmatpush1.bf16.msra.mxu1 %v5423_v51  ;;  %v3619_v59 = vpop.f32.mrf.mxu0  ;;  %3913 = vmatprep.subr.bf16.mxu0 %v5428_v52  ;;  %v5495_v49 = vld [vmem:[%s5924_s6 + $0x9b0] ss:$8 sps:$4 sm:$0xff]   ;;  %v5500_v51 = vld [vmem:[%s5924_s6 + $0x8a4] ss:$8 sps:$4 sm:$0xff]   ;;  %v5501_v54 = vld [vmem:[%s5924_s6 + $0x9a0] ss:$8 sps:$4 sm:$0xff]  }
 0x11b   : > { %v3660_v60 = vpop.f32.mrf.mxu1  ;;  %3954 = vmatprep.subr.bf16.mxu1 %v5431_v26  ;;  %3943 = vmatprep.mubr.bf16.mxu0 %v930_v47  ;;  %v5497_v47 = vld [vmem:[%s5924_s6 + $0x9b4] ss:$8 sps:$4 sm:$0xff]   ;;  %v5503_v52 = vld [vmem:[%s5924_s6 + $0x9a4] ss:$8 sps:$4 sm:$0xff]   ;;  %v893_v26 = vcombine.high %v6212_v32, %v6212_v32  ;;  %v5504_v32 = vld [vmem:[%s5924_s6 + $0x890] ss:$8 sps:$4 sm:$0xff]  }
 0x11c   : > { %v6244_v63 = vadd.f32 %v3660_v60, %v3619_v59  ;;  %3984 = vmatprep.mubr.bf16.mxu1 %v940_v53  ;;  %v3621_v2 = vpop.f32.mrf.mxu0  ;;  %v5498_v53 = vld [vmem:[%s5924_s6 + $0x8a0] ss:$8 sps:$4 sm:$0xff]   ;;  %v5506_v55 = vld [vmem:[%s5924_s6 + $0x894] ss:$8 sps:$4 sm:$0xff]   ;;  %v5507_v59 = vld [vmem:[%s5924_s6 + $0x990] ss:$8 sps:$4 sm:$0xff]  }
 0x11d   : > { %v3662_v3 = vpop.f32.mrf.mxu1  ;;  %3914 = vmatpush1.bf16.msra.mxu0 %v5426_v56  ;;  %v5509_v56 = vld [vmem:[%s5924_s6 + $0x994] ss:$8 sps:$4 sm:$0xff]   ;;  %v5512_v60 = vld [vmem:[%s5924_s6 + $0x884] ss:$8 sps:$4 sm:$0xff]   ;;  %v5513_v2 = vld [vmem:[%s5924_s6 + $0x980] ss:$8 sps:$4 sm:$0xff]  }
 0x11e   : > { %3955 = vmatpush1.bf16.msra.mxu1 %v5429_v57  ;;  %v3622_v4 = vpop.f32.mrf.mxu0  ;;  %3915 = vmatprep.subr.bf16.mxu0 %v5434_v61  ;;  %v6297_v57 = vrot.slane %v893_v26, %v5974_v50  ;;  %v5515_v61 = vld [vmem:[%s5924_s6 + $0x984] ss:$8 sps:$4 sm:$0xff]   ;;  %v5518_v3 = vld [vmem:[%s5924_s6 + $0xa74] ss:$8 sps:$4 sm:$0xff]  }
 0x11f   : > { %v3663_v5 = vpop.f32.mrf.mxu1  ;;  %3956 = vmatprep.subr.bf16.mxu1 %v5437_v62  ;;  %v5521_v4 = vld [vmem:[%s5924_s6 + $0xb74] ss:$8 sps:$4 sm:$0xff]  }
 0x120   : > { %v909_v62 = vcombine.high %v6297_v57, %v6297_v57  ;;  %v5516_v5 = vld [vmem:[%s5924_s6 + $0xa70] ss:$8 sps:$4 sm:$0xff]   ;;  %v5569_v26 = vld [vmem:[%s5924_s6 + $0xbf4] ss:$8 sps:$4 sm:$0xff]  }
 0x121   : > { %3916 = vmatpush1.bf16.msra.mxu0 %v5432_v0  ;;  %v916_v0 = vrot.slane %v6219_v36, %v5974_v50  ;;  %v5524_v36 = vld [vmem:[%s5924_s6 + $0xa64] ss:$8 sps:$4 sm:$0xff]  }
 0x122   : > { %3957 = vmatpush1.bf16.msra.mxu1 %v5435_v1  ;;  %3917 = vmatprep.subr.bf16.mxu0 %v5440_v6  ;;  %v5510_v1 = vld [vmem:[%s5924_s6 + $0x880] ss:$8 sps:$4 sm:$0xff]   ;;  %v5519_v6 = vld [vmem:[%s5924_s6 + $0xb70] ss:$8 sps:$4 sm:$0xff]  }
 0x123   : > { %3958 = vmatprep.subr.bf16.mxu1 %v5443_v8  ;;  %v937_v8 = vrot.slane %v909_v62, %v5974_v50  ;;  %v5576_v62 = vld [vmem:[%s5924_s6 + $0xad0] ss:$8 sps:$4 sm:$0xff]  }
 0x125   : > { %3918 = vmatpush1.bf16.msra.mxu0 %v5438_v9  ;;  %v938_v9 = vcombine.high %v916_v0, %v916_v0 }
 0x126   : > { %3959 = vmatpush1.bf16.msra.mxu1 %v5441_v10  ;;  %3919 = vmatprep.subr.bf16.mxu0 %v5446_v11  ;;  %v5527_v10 = vld [vmem:[%s5924_s6 + $0xb64] ss:$8 sps:$4 sm:$0xff]   ;;  %v941_v11 = vcombine.high %v937_v8, %v937_v8 }
 0x127   : > { %3960 = vmatprep.subr.bf16.mxu1 %v5449_v12 }
 0x129   : > { %3920 = vmatpush1.bf16.msra.mxu0 %v5444_v13 }
 0x12a   : > { %3961 = vmatpush1.bf16.msra.mxu1 %v5447_v14  ;;  %3921 = vmatprep.subr.bf16.mxu0 %v5452_v15  ;;  %v5522_v15 = vld [vmem:[%s5924_s6 + $0xa60] ss:$8 sps:$4 sm:$0xff]  }
 0x12b   : > { %3962 = vmatprep.subr.bf16.mxu1 %v5455_v16  ;;  %v5525_v16 = vld [vmem:[%s5924_s6 + $0xb60] ss:$8 sps:$4 sm:$0xff]  }
 0x12d   : > { %3922 = vmatpush1.bf16.msra.mxu0 %v5450_v17 }
 0x12e   : > { %3963 = vmatpush1.bf16.msra.mxu1 %v5453_v18  ;;  %3923 = vmatprep.subr.bf16.mxu0 %v5458_v19  ;;  %v5530_v19 = vld [vmem:[%s5924_s6 + $0xa54] ss:$8 sps:$4 sm:$0xff]  }
 0x12f   : > { %3964 = vmatprep.subr.bf16.mxu1 %v5461_v20  ;;  %v5533_v20 = vld [vmem:[%s5924_s6 + $0xb54] ss:$8 sps:$4 sm:$0xff]  }
 0x131   : > { %3924 = vmatpush1.bf16.msra.mxu0 %v5456_v21 }
 0x132   : > { %3965 = vmatpush1.bf16.msra.mxu1 %v5459_v22  ;;  %3925 = vmatprep.subr.bf16.mxu0 %v5464_v23 }
 0x133   : > { %3966 = vmatprep.subr.bf16.mxu1 %v5467_v24 }
 0x135   : > { %3926 = vmatpush1.bf16.msra.mxu0 %v5462_v25  ;;  %v5528_v25 = vld [vmem:[%s5924_s6 + $0xa50] ss:$8 sps:$4 sm:$0xff]  }
 0x136   : > { %3967 = vmatpush1.bf16.msra.mxu1 %v5465_v27  ;;  %3927 = vmatprep.subr.bf16.mxu0 %v5470_v28  ;;  %v5531_v27 = vld [vmem:[%s5924_s6 + $0xb50] ss:$8 sps:$4 sm:$0xff]  }
 0x137   : > { %3968 = vmatprep.subr.bf16.mxu1 %v5473_v7 }
 0x139   : > { %3928 = vmatpush2.bf16.msra.mxu0 %v5468_v29  ;;  %v5539_v29 = vld [vmem:[%s5924_s6 + $0xb44] ss:$8 sps:$4 sm:$0xff]  }
 0x13a   : > { %3969 = vmatpush2.bf16.msra.mxu1 %v5471_v31  ;;  %3929 = vmatprep.subr.bf16.mxu0 %v5476_v33  ;;  %v5534_v31 = vld [vmem:[%s5924_s6 + $0xa40] ss:$8 sps:$4 sm:$0xff]  }
 0x13b   : > { %3970 = vmatprep.subr.bf16.mxu1 %v5479_v34  ;;  %v5537_v33 = vld [vmem:[%s5924_s6 + $0xb40] ss:$8 sps:$4 sm:$0xff]   ;;  %v5542_v34 = vld [vmem:[%s5924_s6 + $0xa34] ss:$8 sps:$4 sm:$0xff]  }
 0x13d   : > { %3930 = vmatpush2.bf16.msra.mxu0 %v5474_v35  ;;  %v5545_v35 = vld [vmem:[%s5924_s6 + $0xb34] ss:$8 sps:$4 sm:$0xff]  }
 0x13e   : > { %3971 = vmatpush2.bf16.msra.mxu1 %v5477_v37  ;;  %3931 = vmatprep.subr.bf16.mxu0 %v5482_v38  ;;  %v5540_v37 = vld [vmem:[%s5924_s6 + $0xa30] ss:$8 sps:$4 sm:$0xff]  }
 0x13f   : > { %3972 = vmatprep.subr.bf16.mxu1 %v5485_v39  ;;  %v5543_v38 = vld [vmem:[%s5924_s6 + $0xb30] ss:$8 sps:$4 sm:$0xff]   ;;  %v5548_v39 = vld [vmem:[%s5924_s6 + $0xa24] ss:$8 sps:$4 sm:$0xff]  }
 0x141   : > { %3932 = vmatpush2.bf16.msra.mxu0 %v5480_v30  ;;  %v5551_v30 = vld [vmem:[%s5924_s6 + $0xb24] ss:$8 sps:$4 sm:$0xff]  }
 0x142   : > { %3973 = vmatpush2.bf16.msra.mxu1 %v5483_v40  ;;  %3933 = vmatprep.subr.bf16.mxu0 %v5488_v41  ;;  %v5546_v40 = vld [vmem:[%s5924_s6 + $0xa20] ss:$8 sps:$4 sm:$0xff]  }
 0x143   : > { %3974 = vmatprep.subr.bf16.mxu1 %v5491_v42  ;;  %v5549_v41 = vld [vmem:[%s5924_s6 + $0xb20] ss:$8 sps:$4 sm:$0xff]   ;;  %v5554_v42 = vld [vmem:[%s5924_s6 + $0xa14] ss:$8 sps:$4 sm:$0xff]  }
 0x145   : > { %3934 = vmatpush2.bf16.msra.mxu0 %v5486_v43  ;;  %v5557_v43 = vld [vmem:[%s5924_s6 + $0xb14] ss:$8 sps:$4 sm:$0xff]  }
 0x146   : > { %3975 = vmatpush2.bf16.msra.mxu1 %v5489_v45  ;;  %3935 = vmatprep.subr.bf16.mxu0 %v5494_v46  ;;  %v5552_v45 = vld [vmem:[%s5924_s6 + $0xa10] ss:$8 sps:$4 sm:$0xff]  }
 0x147   : > { %3976 = vmatprep.subr.bf16.mxu1 %v5497_v47  ;;  %v5555_v46 = vld [vmem:[%s5924_s6 + $0xb10] ss:$8 sps:$4 sm:$0xff]   ;;  %v5560_v47 = vld [vmem:[%s5924_s6 + $0xa04] ss:$8 sps:$4 sm:$0xff]  }
 0x149   : > { %3936 = vmatpush2.bf16.msra.mxu0 %v5492_v48  ;;  %v5563_v48 = vld [vmem:[%s5924_s6 + $0xb04] ss:$8 sps:$4 sm:$0xff]  }
 0x14a   : > { %3977 = vmatpush2.bf16.msra.mxu1 %v5495_v49  ;;  %3937 = vmatprep.subr.bf16.mxu0 %v5500_v51  ;;  %v5558_v49 = vld [vmem:[%s5924_s6 + $0xa00] ss:$8 sps:$4 sm:$0xff]  }
 0x14b   : > { %3978 = vmatprep.subr.bf16.mxu1 %v5503_v52  ;;  %v5561_v51 = vld [vmem:[%s5924_s6 + $0xb00] ss:$8 sps:$4 sm:$0xff]   ;;  %v5566_v52 = vld [vmem:[%s5924_s6 + $0xaf4] ss:$8 sps:$4 sm:$0xff]  }
 0x14d   : > { %3938 = vmatpush2.bf16.msra.mxu0 %v5498_v53  ;;  %v5564_v53 = vld [vmem:[%s5924_s6 + $0xaf0] ss:$8 sps:$4 sm:$0xff]  }
 0x14e   : > { %3979 = vmatpush2.bf16.msra.mxu1 %v5501_v54  ;;  %3939 = vmatprep.subr.bf16.mxu0 %v5506_v55  ;;  %v5567_v54 = vld [vmem:[%s5924_s6 + $0xbf0] ss:$8 sps:$4 sm:$0xff]   ;;  %v5572_v55 = vld [vmem:[%s5924_s6 + $0xae4] ss:$8 sps:$4 sm:$0xff]  }
 0x14f   : > { %3980 = vmatprep.subr.bf16.mxu1 %v5509_v56  ;;  %v5575_v56 = vld [vmem:[%s5924_s6 + $0xbe4] ss:$8 sps:$4 sm:$0xff]  }
 0x151   : > { %3940 = vmatpush2.bf16.msra.mxu0 %v5504_v32  ;;  %v5570_v32 = vld [vmem:[%s5924_s6 + $0xae0] ss:$8 sps:$4 sm:$0xff]  }
 0x152   : > { %3981 = vmatpush2.bf16.msra.mxu1 %v5507_v59  ;;  %3941 = vmatprep.subr.bf16.mxu0 %v5512_v60  ;;  %v5573_v59 = vld [vmem:[%s5924_s6 + $0xbe0] ss:$8 sps:$4 sm:$0xff]   ;;  %v5578_v60 = vld [vmem:[%s5924_s6 + $0xad4] ss:$8 sps:$4 sm:$0xff]  }
 0x153   : > { %3982 = vmatprep.subr.bf16.mxu1 %v5515_v61  ;;  %v5581_v61 = vld [vmem:[%s5924_s6 + $0xbd4] ss:$8 sps:$4 sm:$0xff]  }
 0x155   : > { %3942 = vmatpush2.bf16.msra.mxu0 %v5510_v1  ;;  %v5584_v1 = vld [vmem:[%s5924_s6 + $0xac4] ss:$8 sps:$4 sm:$0xff]  }
 0x156   : > { %3983 = vmatpush2.bf16.msra.mxu1 %v5513_v2  ;;  %3993 = vmatprep.subr.bf16.mxu0 %v5518_v3  ;;  %v5587_v2 = vld [vmem:[%s5924_s6 + $0xbc4] ss:$8 sps:$4 sm:$0xff]   ;;  %v5582_v3 = vld [vmem:[%s5924_s6 + $0xac0] ss:$8 sps:$4 sm:$0xff]  }
 0x157   : > { %4034 = vmatprep.subr.bf16.mxu1 %v5521_v4  ;;  %v5585_v4 = vld [vmem:[%s5924_s6 + $0xbc0] ss:$8 sps:$4 sm:$0xff]  }
 0x158   : > { %v3699_v12 = vpop.f32.mrf.mxu0  ;;  %3944 = vmatmul.mubr.bf16.vlgmr.msra.gmra.mxu0 %v916_v0  ;;  %v5579_v0 = vld [vmem:[%s5924_s6 + $0xbd0] ss:$8 sps:$4 sm:$0xff]  }
 0x159   : > { %v3740_v13 = vpop.f32.mrf.mxu1  ;;  %3985 = vmatmul.mubr.bf16.vlgmr.msra.gmra.mxu1 %v938_v9  ;;  %v3700_v14 = vadd.f32 %v3699_v12, %v6240_v58  ;;  %3994 = vmatpush1.bf16.msra.mxu0 %v5516_v5  ;;  %v5590_v5 = vld [vmem:[%s5924_s6 + $0xab4] ss:$8 sps:$4 sm:$0xff]   ;;  %v5591_v9 = vld [vmem:[%s5924_s6 + $0xbb0] ss:$8 sps:$4 sm:$0xff]   ;;  %v5594_v12 = vld [vmem:[%s5924_s6 + $0xaa0] ss:$8 sps:$4 sm:$0xff]  }
 0x15a   : > { %4035 = vmatpush1.bf16.msra.mxu1 %v5519_v6  ;;  %v3701_v17 = vpop.f32.mrf.mxu0  ;;  %3995 = vmatprep.subr.bf16.mxu0 %v5524_v36  ;;  %v5593_v6 = vld [vmem:[%s5924_s6 + $0xbb4] ss:$8 sps:$4 sm:$0xff]   ;;  %v5596_v36 = vld [vmem:[%s5924_s6 + $0xaa4] ss:$8 sps:$4 sm:$0xff]  }
 0x15b   : > { %v3742_v18 = vpop.f32.mrf.mxu1  ;;  %4036 = vmatprep.subr.bf16.mxu1 %v5527_v10  ;;  %v6321_v21 = vadd.f32 %v3740_v13, %v3700_v14  ;;  %v3702_v22 = vadd.f32 %v3701_v17, %v6244_v63  ;;  %4025 = vmatprep.mubr.bf16.mxu0 %v937_v8  ;;  %v5536_v63 = vld [vmem:[%s5924_s6 + $0xa44] ss:$8 sps:$4 sm:$0xff]   ;;  %v5588_v8 = vld [vmem:[%s5924_s6 + $0xab0] ss:$8 sps:$4 sm:$0xff]   ;;  %v5597_v13 = vld [vmem:[%s5924_s6 + $0xba0] ss:$8 sps:$4 sm:$0xff]  }
 0x15c   : > { %4066 = vmatprep.mubr.bf16.mxu1 %v941_v11  ;;  %v3703_v58 = vpop.f32.mrf.mxu0  ;;  %v5599_v10 = vld [vmem:[%s5924_s6 + $0xba4] ss:$8 sps:$4 sm:$0xff]   ;;  %v6371_v11 = vld [vmem:[%s5919_s27 + $0x18] sm:$0xff] }
 0x15d   : > { %v3744_v23 = vpop.f32.mrf.mxu1  ;;  %v6324_v24 = vadd.f32 %v3742_v18, %v3702_v22  ;;  %3996 = vmatpush1.bf16.msra.mxu0 %v5522_v15  ;;  %v5602_v14 = vld [vmem:[%s5924_s6 + $0xa94] ss:$8 sps:$4 sm:$0xff]   ;;  %v5600_v17 = vld [vmem:[%s5924_s6 + $0xa90] ss:$8 sps:$4 sm:$0xff]   ;;  %v923_v58 = vrot.slane %v6297_v57, %v5974_v50  ;;  %v5621_v57 = vld [vmem:[%s5924_s6 + $0xc64] ss:$8 sps:$4 sm:$0xff]  }
 0x15e   : > { %4037 = vmatpush1.bf16.msra.mxu1 %v5525_v16  ;;  %v3704_v28 = vpop.f32.mrf.mxu0  ;;  %3997 = vmatprep.subr.bf16.mxu0 %v5530_v19  ;;  %v5605_v15 = vld [vmem:[%s5924_s6 + $0xb94] ss:$8 sps:$4 sm:$0xff]   ;;  %v6379_v16 = vrot.slane %v6371_v11, %v5974_v50  ;;  %v5603_v18 = vld [vmem:[%s5924_s6 + $0xb90] ss:$8 sps:$4 sm:$0xff]   ;;  %v5608_v19 = vld [vmem:[%s5924_s6 + $0xa84] ss:$8 sps:$4 sm:$0xff]  }
 0x15f   : > { %v3745_v7 = vpop.f32.mrf.mxu1  ;;  %4038 = vmatprep.subr.bf16.mxu1 %v5533_v20  ;;  %v5611_v20 = vld [vmem:[%s5924_s6 + $0xb84] ss:$8 sps:$4 sm:$0xff]   ;;  %v5606_v23 = vld [vmem:[%s5924_s6 + $0xa80] ss:$8 sps:$4 sm:$0xff]   ;;  %v5618_v28 = vld [vmem:[%s5924_s6 + $0xd74] ss:$8 sps:$4 sm:$0xff]  }
 0x160   : > { %v957_v22 = vcombine.high %v6379_v16, %v6379_v16 }
 0x161   : > { %3998 = vmatpush1.bf16.msra.mxu0 %v5528_v25  ;;  %v5609_v25 = vld [vmem:[%s5924_s6 + $0xb80] ss:$8 sps:$4 sm:$0xff]  }
 0x162   : > { %4039 = vmatpush1.bf16.msra.mxu1 %v5531_v27  ;;  %3999 = vmatprep.subr.bf16.mxu0 %v5536_v63  ;;  %v5615_v27 = vld [vmem:[%s5924_s6 + $0xc74] ss:$8 sps:$4 sm:$0xff]   ;;  %v979_v7 = vrot.slane %v957_v22, %v5974_v50  ;;  %v939_v63 = vcombine.high %v923_v58, %v923_v58 }
 0x163   : > { %4040 = vmatprep.subr.bf16.mxu1 %v5539_v29  ;;  %v5613_v29 = vld [vmem:[%s5924_s6 + $0xc70] ss:$8 sps:$4 sm:$0xff]   ;;  %v5678_v22 = vld [vmem:[%s5924_s6 + $0xdd4] ss:$8 sps:$4 sm:$0xff]  }
 0x165   : > { %4000 = vmatpush1.bf16.msra.mxu0 %v5534_v31  ;;  %v5616_v31 = vld [vmem:[%s5924_s6 + $0xd70] ss:$8 sps:$4 sm:$0xff]  }
 0x166   : > { %4041 = vmatpush1.bf16.msra.mxu1 %v5537_v33  ;;  %4001 = vmatprep.subr.bf16.mxu0 %v5542_v34  ;;  %v5624_v33 = vld [vmem:[%s5924_s6 + $0xd64] ss:$8 sps:$4 sm:$0xff]   ;;  %v989_v34 = vcombine.high %v979_v7, %v979_v7 }
 0x167   : > { %4042 = vmatprep.subr.bf16.mxu1 %v5545_v35 }
 0x169   : > { %4002 = vmatpush1.bf16.msra.mxu0 %v5540_v37 }
 0x16a   : > { %4043 = vmatpush1.bf16.msra.mxu1 %v5543_v38  ;;  %4003 = vmatprep.subr.bf16.mxu0 %v5548_v39  ;;  %v5619_v39 = vld [vmem:[%s5924_s6 + $0xc60] ss:$8 sps:$4 sm:$0xff]  }
 0x16b   : > { %4044 = vmatprep.subr.bf16.mxu1 %v5551_v30  ;;  %v5622_v30 = vld [vmem:[%s5924_s6 + $0xd60] ss:$8 sps:$4 sm:$0xff]  }
 0x16d   : > { %4004 = vmatpush1.bf16.msra.mxu0 %v5546_v40 }
 0x16e   : > { %4045 = vmatpush1.bf16.msra.mxu1 %v5549_v41  ;;  %4005 = vmatprep.subr.bf16.mxu0 %v5554_v42  ;;  %v5627_v42 = vld [vmem:[%s5924_s6 + $0xc54] ss:$8 sps:$4 sm:$0xff]  }
 0x16f   : > { %4046 = vmatprep.subr.bf16.mxu1 %v5557_v43  ;;  %v5630_v43 = vld [vmem:[%s5924_s6 + $0xd54] ss:$8 sps:$4 sm:$0xff]  }
 0x171   : > { %4006 = vmatpush1.bf16.msra.mxu0 %v5552_v45 }
 0x172   : > { %4047 = vmatpush1.bf16.msra.mxu1 %v5555_v46  ;;  %4007 = vmatprep.subr.bf16.mxu0 %v5560_v47 }
 0x173   : > { %4048 = vmatprep.subr.bf16.mxu1 %v5563_v48 }
 0x175   : > { %4008 = vmatpush1.bf16.msra.mxu0 %v5558_v49  ;;  %v5625_v49 = vld [vmem:[%s5924_s6 + $0xc50] ss:$8 sps:$4 sm:$0xff]  }
 0x176   : > { %4049 = vmatpush1.bf16.msra.mxu1 %v5561_v51  ;;  %4009 = vmatprep.subr.bf16.mxu0 %v5566_v52  ;;  %v5628_v51 = vld [vmem:[%s5924_s6 + $0xd50] ss:$8 sps:$4 sm:$0xff]  }
 0x177   : > { %4050 = vmatprep.subr.bf16.mxu1 %v5569_v26 }
 0x179   : > { %4010 = vmatpush2.bf16.msra.mxu0 %v5564_v53  ;;  %v5636_v53 = vld [vmem:[%s5924_s6 + $0xd44] ss:$8 sps:$4 sm:$0xff]  }
 0x17a   : > { %4051 = vmatpush2.bf16.msra.mxu1 %v5567_v54  ;;  %4011 = vmatprep.subr.bf16.mxu0 %v5572_v55  ;;  %v5631_v54 = vld [vmem:[%s5924_s6 + $0xc40] ss:$8 sps:$4 sm:$0xff]  }
 0x17b   : > { %4052 = vmatprep.subr.bf16.mxu1 %v5575_v56  ;;  %v5634_v55 = vld [vmem:[%s5924_s6 + $0xd40] ss:$8 sps:$4 sm:$0xff]   ;;  %v5639_v56 = vld [vmem:[%s5924_s6 + $0xc34] ss:$8 sps:$4 sm:$0xff]  }
 0x17d   : > { %4012 = vmatpush2.bf16.msra.mxu0 %v5570_v32  ;;  %v5642_v32 = vld [vmem:[%s5924_s6 + $0xd34] ss:$8 sps:$4 sm:$0xff]  }
 0x17e   : > { %4053 = vmatpush2.bf16.msra.mxu1 %v5573_v59  ;;  %4013 = vmatprep.subr.bf16.mxu0 %v5578_v60  ;;  %v5637_v59 = vld [vmem:[%s5924_s6 + $0xc30] ss:$8 sps:$4 sm:$0xff]  }
 0x17f   : > { %4054 = vmatprep.subr.bf16.mxu1 %v5581_v61  ;;  %v5640_v60 = vld [vmem:[%s5924_s6 + $0xd30] ss:$8 sps:$4 sm:$0xff]   ;;  %v5645_v61 = vld [vmem:[%s5924_s6 + $0xc24] ss:$8 sps:$4 sm:$0xff]  }
 0x181   : > { %4014 = vmatpush2.bf16.msra.mxu0 %v5576_v62  ;;  %v5648_v62 = vld [vmem:[%s5924_s6 + $0xd24] ss:$8 sps:$4 sm:$0xff]  }
 0x182   : > { %4055 = vmatpush2.bf16.msra.mxu1 %v5579_v0  ;;  %4015 = vmatprep.subr.bf16.mxu0 %v5584_v1  ;;  %v5643_v0 = vld [vmem:[%s5924_s6 + $0xc20] ss:$8 sps:$4 sm:$0xff]  }
 0x183   : > { %4056 = vmatprep.subr.bf16.mxu1 %v5587_v2  ;;  %v5646_v1 = vld [vmem:[%s5924_s6 + $0xd20] ss:$8 sps:$4 sm:$0xff]   ;;  %v5651_v2 = vld [vmem:[%s5924_s6 + $0xc14] ss:$8 sps:$4 sm:$0xff]  }
 0x185   : > { %4016 = vmatpush2.bf16.msra.mxu0 %v5582_v3  ;;  %v5654_v3 = vld [vmem:[%s5924_s6 + $0xd14] ss:$8 sps:$4 sm:$0xff]  }
 0x186   : > { %4057 = vmatpush2.bf16.msra.mxu1 %v5585_v4  ;;  %4017 = vmatprep.subr.bf16.mxu0 %v5590_v5  ;;  %v5649_v4 = vld [vmem:[%s5924_s6 + $0xc10] ss:$8 sps:$4 sm:$0xff]  }
 0x187   : > { %4058 = vmatprep.subr.bf16.mxu1 %v5593_v6  ;;  %v5652_v5 = vld [vmem:[%s5924_s6 + $0xd10] ss:$8 sps:$4 sm:$0xff]   ;;  %v5657_v6 = vld [vmem:[%s5924_s6 + $0xc04] ss:$8 sps:$4 sm:$0xff]  }
 0x189   : > { %4018 = vmatpush2.bf16.msra.mxu0 %v5588_v8  ;;  %v5660_v8 = vld [vmem:[%s5924_s6 + $0xd04] ss:$8 sps:$4 sm:$0xff]  }
 0x18a   : > { %4059 = vmatpush2.bf16.msra.mxu1 %v5591_v9  ;;  %4019 = vmatprep.subr.bf16.mxu0 %v5596_v36  ;;  %v5655_v9 = vld [vmem:[%s5924_s6 + $0xc00] ss:$8 sps:$4 sm:$0xff]  }
 0x18b   : > { %4060 = vmatprep.subr.bf16.mxu1 %v5599_v10  ;;  %v5658_v36 = vld [vmem:[%s5924_s6 + $0xd00] ss:$8 sps:$4 sm:$0xff]   ;;  %v5663_v10 = vld [vmem:[%s5924_s6 + $0xcf4] ss:$8 sps:$4 sm:$0xff]  }
 0x18d   : > { %4020 = vmatpush2.bf16.msra.mxu0 %v5594_v12  ;;  %v5666_v12 = vld [vmem:[%s5924_s6 + $0xdf4] ss:$8 sps:$4 sm:$0xff]  }
 0x18e   : > { %4061 = vmatpush2.bf16.msra.mxu1 %v5597_v13  ;;  %4021 = vmatprep.subr.bf16.mxu0 %v5602_v14  ;;  %v5661_v13 = vld [vmem:[%s5924_s6 + $0xcf0] ss:$8 sps:$4 sm:$0xff]  }
 0x18f   : > { %4062 = vmatprep.subr.bf16.mxu1 %v5605_v15  ;;  %v5664_v14 = vld [vmem:[%s5924_s6 + $0xdf0] ss:$8 sps:$4 sm:$0xff]   ;;  %v5669_v15 = vld [vmem:[%s5924_s6 + $0xce4] ss:$8 sps:$4 sm:$0xff]  }
 0x191   : > { %4022 = vmatpush2.bf16.msra.mxu0 %v5600_v17  ;;  %v5672_v17 = vld [vmem:[%s5924_s6 + $0xde4] ss:$8 sps:$4 sm:$0xff]  }
 0x192   : > { %4063 = vmatpush2.bf16.msra.mxu1 %v5603_v18  ;;  %4023 = vmatprep.subr.bf16.mxu0 %v5608_v19  ;;  %v5667_v18 = vld [vmem:[%s5924_s6 + $0xce0] ss:$8 sps:$4 sm:$0xff]  }
 0x193   : > { %4064 = vmatprep.subr.bf16.mxu1 %v5611_v20  ;;  %v5670_v19 = vld [vmem:[%s5924_s6 + $0xde0] ss:$8 sps:$4 sm:$0xff]   ;;  %v5675_v20 = vld [vmem:[%s5924_s6 + $0xcd4] ss:$8 sps:$4 sm:$0xff]  }
 0x195   : > { %4024 = vmatpush2.bf16.msra.mxu0 %v5606_v23  ;;  %v5676_v23 = vld [vmem:[%s5924_s6 + $0xdd0] ss:$8 sps:$4 sm:$0xff]  }
 0x196   : > { %4065 = vmatpush2.bf16.msra.mxu1 %v5609_v25  ;;  %4075 = vmatprep.subr.bf16.mxu0 %v5615_v27  ;;  %v5681_v25 = vld [vmem:[%s5924_s6 + $0xcc4] ss:$8 sps:$4 sm:$0xff]  }
 0x197   : > { %4116 = vmatprep.subr.bf16.mxu1 %v5618_v28  ;;  %v5684_v27 = vld [vmem:[%s5924_s6 + $0xdc4] ss:$8 sps:$4 sm:$0xff]   ;;  %v5679_v28 = vld [vmem:[%s5924_s6 + $0xcc0] ss:$8 sps:$4 sm:$0xff]  }
 0x198   : > { %v3781_v35 = vpop.f32.mrf.mxu0  ;;  %4026 = vmatmul.mubr.bf16.vlgmr.msra.gmra.mxu0 %v923_v58  ;;  %v5673_v58 = vld [vmem:[%s5924_s6 + $0xcd0] ss:$8 sps:$4 sm:$0xff]  }
 0x199   : > { %v3822_v37 = vpop.f32.mrf.mxu1  ;;  %4067 = vmatmul.mubr.bf16.vlgmr.msra.gmra.mxu1 %v939_v63  ;;  %v3782_v38 = vadd.f32 %v3781_v35, %v6321_v21  ;;  %4076 = vmatpush1.bf16.msra.mxu0 %v5613_v29  ;;  %v5687_v63 = vld [vmem:[%s5924_s6 + $0xcb4] ss:$8 sps:$4 sm:$0xff]   ;;  %v942_v35 = vcombine.high %v6371_v11, %v6371_v11  ;;  %v5697_v11 = vld [vmem:[%s5924_s6 + $0xc90] ss:$8 sps:$4 sm:$0xff]  }
 0x19a   : > { %4117 = vmatpush1.bf16.msra.mxu1 %v5616_v31  ;;  %v3783_v40 = vpop.f32.mrf.mxu0  ;;  %4077 = vmatprep.subr.bf16.mxu0 %v5621_v57  ;;  %v5690_v29 = vld [vmem:[%s5924_s6 + $0xdb4] ss:$8 sps:$4 sm:$0xff]   ;;  %v5685_v31 = vld [vmem:[%s5924_s6 + $0xcb0] ss:$8 sps:$4 sm:$0xff]  }
 0x19b   : > { %v3824_v41 = vpop.f32.mrf.mxu1  ;;  %4118 = vmatprep.subr.bf16.mxu1 %v5624_v33  ;;  %v6403_v45 = vadd.f32 %v3822_v37, %v3782_v38  ;;  %v3784_v46 = vadd.f32 %v3783_v40, %v6324_v24  ;;  %4107 = vmatprep.mubr.bf16.mxu0 %v979_v7  ;;  %v5633_v24 = vld [vmem:[%s5924_s6 + $0xc44] ss:$8 sps:$4 sm:$0xff]   ;;  %v5682_v7 = vld [vmem:[%s5924_s6 + $0xdc0] ss:$8 sps:$4 sm:$0xff]   ;;  %v5688_v57 = vld [vmem:[%s5924_s6 + $0xdb0] ss:$8 sps:$4 sm:$0xff]   ;;  %v6459_v40 = vrot.slane %v942_v35, %v5974_v50 }
 0x19c   : > { %4148 = vmatprep.mubr.bf16.mxu1 %v989_v34  ;;  %v3785_v21 = vpop.f32.mrf.mxu0  ;;  %v5693_v33 = vld [vmem:[%s5924_s6 + $0xca4] ss:$8 sps:$4 sm:$0xff]   ;;  %v5691_v37 = vld [vmem:[%s5924_s6 + $0xca0] ss:$8 sps:$4 sm:$0xff]   ;;  %v5762_v35 = vld [vmem:[%s5924_s6 + $0xff4] ss:$8 sps:$4 sm:$0xff]  }
 0x19d   : > { %v3826_v47 = vpop.f32.mrf.mxu1  ;;  %v6406_v48 = vadd.f32 %v3824_v41, %v3784_v46  ;;  %4078 = vmatpush1.bf16.msra.mxu0 %v5619_v39  ;;  %v5696_v34 = vld [vmem:[%s5924_s6 + $0xda4] ss:$8 sps:$4 sm:$0xff]   ;;  %v5694_v38 = vld [vmem:[%s5924_s6 + $0xda0] ss:$8 sps:$4 sm:$0xff]   ;;  %v5699_v39 = vld [vmem:[%s5924_s6 + $0xc94] ss:$8 sps:$4 sm:$0xff]   ;;  %v958_v46 = vcombine.high %v6459_v40, %v6459_v40  ;;  %v965_v21 = vrot.slane %v6379_v16, %v5974_v50 }
 0x19e   : > { %4119 = vmatpush1.bf16.msra.mxu1 %v5622_v30  ;;  %v3786_v52 = vpop.f32.mrf.mxu0  ;;  %4079 = vmatprep.subr.bf16.mxu0 %v5627_v42  ;;  %v5702_v30 = vld [vmem:[%s5924_s6 + $0xd94] ss:$8 sps:$4 sm:$0xff]   ;;  %v5700_v41 = vld [vmem:[%s5924_s6 + $0xd90] ss:$8 sps:$4 sm:$0xff]   ;;  %v5705_v42 = vld [vmem:[%s5924_s6 + $0xc84] ss:$8 sps:$4 sm:$0xff]  }
 0x19f   : > { %v3827_v26 = vpop.f32.mrf.mxu1  ;;  %4120 = vmatprep.subr.bf16.mxu1 %v5630_v43  ;;  %v5708_v43 = vld [vmem:[%s5924_s6 + $0xd84] ss:$8 sps:$4 sm:$0xff]   ;;  %v5703_v47 = vld [vmem:[%s5924_s6 + $0xc80] ss:$8 sps:$4 sm:$0xff]   ;;  %v5714_v52 = vld [vmem:[%s5924_s6 + $0xf74] ss:$8 sps:$4 sm:$0xff]  }
 0x1a0   : > { %v986_v26 = vrot.slane %v958_v46, %v5974_v50  ;;  %v5717_v16 = vld [vmem:[%s5924_s6 + $0xe64] ss:$8 sps:$4 sm:$0xff]   ;;  %v5769_v46 = vld [vmem:[%s5924_s6 + $0xed0] ss:$8 sps:$4 sm:$0xff]  }
 0x1a1   : > { %4080 = vmatpush1.bf16.msra.mxu0 %v5625_v49  ;;  %v5706_v49 = vld [vmem:[%s5924_s6 + $0xd80] ss:$8 sps:$4 sm:$0xff]  }
 0x1a2   : > { %4121 = vmatpush1.bf16.msra.mxu1 %v5628_v51  ;;  %4081 = vmatprep.subr.bf16.mxu0 %v5633_v24  ;;  %v5711_v51 = vld [vmem:[%s5924_s6 + $0xe74] ss:$8 sps:$4 sm:$0xff]   ;;  %v987_v24 = vcombine.high %v965_v21, %v965_v21 }
 0x1a3   : > { %4122 = vmatprep.subr.bf16.mxu1 %v5636_v53  ;;  %v5709_v53 = vld [vmem:[%s5924_s6 + $0xe70] ss:$8 sps:$4 sm:$0xff]  }
 0x1a5   : > { %4082 = vmatpush1.bf16.msra.mxu0 %v5631_v54  ;;  %v5712_v54 = vld [vmem:[%s5924_s6 + $0xf70] ss:$8 sps:$4 sm:$0xff]  }
 0x1a6   : > { %4123 = vmatpush1.bf16.msra.mxu1 %v5634_v55  ;;  %4083 = vmatprep.subr.bf16.mxu0 %v5639_v56  ;;  %v5720_v55 = vld [vmem:[%s5924_s6 + $0xf64] ss:$8 sps:$4 sm:$0xff]   ;;  %v990_v56 = vcombine.high %v986_v26, %v986_v26 }
 0x1a7   : > { %4124 = vmatprep.subr.bf16.mxu1 %v5642_v32 }
 0x1a9   : > { %4084 = vmatpush1.bf16.msra.mxu0 %v5637_v59 }
 0x1aa   : > { %4125 = vmatpush1.bf16.msra.mxu1 %v5640_v60  ;;  %4085 = vmatprep.subr.bf16.mxu0 %v5645_v61  ;;  %v5715_v61 = vld [vmem:[%s5924_s6 + $0xe60] ss:$8 sps:$4 sm:$0xff]  }
 0x1ab   : > { %4126 = vmatprep.subr.bf16.mxu1 %v5648_v62  ;;  %v5718_v62 = vld [vmem:[%s5924_s6 + $0xf60] ss:$8 sps:$4 sm:$0xff]  }
 0x1ad   : > { %4086 = vmatpush1.bf16.msra.mxu0 %v5643_v0 }
 0x1ae   : > { %4127 = vmatpush1.bf16.msra.mxu1 %v5646_v1  ;;  %4087 = vmatprep.subr.bf16.mxu0 %v5651_v2  ;;  %v5723_v2 = vld [vmem:[%s5924_s6 + $0xe54] ss:$8 sps:$4 sm:$0xff]  }
 0x1af   : > { %4128 = vmatprep.subr.bf16.mxu1 %v5654_v3  ;;  %v5726_v3 = vld [vmem:[%s5924_s6 + $0xf54] ss:$8 sps:$4 sm:$0xff]  }
 0x1b1   : > { %4088 = vmatpush1.bf16.msra.mxu0 %v5649_v4 }
 0x1b2   : > { %4129 = vmatpush1.bf16.msra.mxu1 %v5652_v5  ;;  %4089 = vmatprep.subr.bf16.mxu0 %v5657_v6 }
 0x1b3   : > { %4130 = vmatprep.subr.bf16.mxu1 %v5660_v8 }
 0x1b5   : > { %4090 = vmatpush1.bf16.msra.mxu0 %v5655_v9  ;;  %v5721_v9 = vld [vmem:[%s5924_s6 + $0xe50] ss:$8 sps:$4 sm:$0xff]  }
 0x1b6   : > { %4131 = vmatpush1.bf16.msra.mxu1 %v5658_v36  ;;  %4091 = vmatprep.subr.bf16.mxu0 %v5663_v10  ;;  %v5724_v36 = vld [vmem:[%s5924_s6 + $0xf50] ss:$8 sps:$4 sm:$0xff]  }
 0x1b7   : > { %4132 = vmatprep.subr.bf16.mxu1 %v5666_v12 }
 0x1b9   : > { %4092 = vmatpush2.bf16.msra.mxu0 %v5661_v13  ;;  %v5732_v13 = vld [vmem:[%s5924_s6 + $0xf44] ss:$8 sps:$4 sm:$0xff]  }
 0x1ba   : > { %4133 = vmatpush2.bf16.msra.mxu1 %v5664_v14  ;;  %4093 = vmatprep.subr.bf16.mxu0 %v5669_v15  ;;  %v5727_v14 = vld [vmem:[%s5924_s6 + $0xe40] ss:$8 sps:$4 sm:$0xff]  }
 0x1bb   : > { %4134 = vmatprep.subr.bf16.mxu1 %v5672_v17  ;;  %v5730_v15 = vld [vmem:[%s5924_s6 + $0xf40] ss:$8 sps:$4 sm:$0xff]   ;;  %v5735_v17 = vld [vmem:[%s5924_s6 + $0xe34] ss:$8 sps:$4 sm:$0xff]  }
 0x1bd   : > { %4094 = vmatpush2.bf16.msra.mxu0 %v5667_v18  ;;  %v5738_v18 = vld [vmem:[%s5924_s6 + $0xf34] ss:$8 sps:$4 sm:$0xff]  }
 0x1be   : > { %4135 = vmatpush2.bf16.msra.mxu1 %v5670_v19  ;;  %4095 = vmatprep.subr.bf16.mxu0 %v5675_v20  ;;  %v5733_v19 = vld [vmem:[%s5924_s6 + $0xe30] ss:$8 sps:$4 sm:$0xff]  }
 0x1bf   : > { %4136 = vmatprep.subr.bf16.mxu1 %v5678_v22  ;;  %v5736_v20 = vld [vmem:[%s5924_s6 + $0xf30] ss:$8 sps:$4 sm:$0xff]   ;;  %v5741_v22 = vld [vmem:[%s5924_s6 + $0xe24] ss:$8 sps:$4 sm:$0xff]  }
 0x1c1   : > { %4096 = vmatpush2.bf16.msra.mxu0 %v5673_v58  ;;  %v5744_v58 = vld [vmem:[%s5924_s6 + $0xf24] ss:$8 sps:$4 sm:$0xff]  }
 0x1c2   : > { %4137 = vmatpush2.bf16.msra.mxu1 %v5676_v23  ;;  %4097 = vmatprep.subr.bf16.mxu0 %v5681_v25  ;;  %v5739_v23 = vld [vmem:[%s5924_s6 + $0xe20] ss:$8 sps:$4 sm:$0xff]  }
 0x1c3   : > { %4138 = vmatprep.subr.bf16.mxu1 %v5684_v27  ;;  %v5742_v25 = vld [vmem:[%s5924_s6 + $0xf20] ss:$8 sps:$4 sm:$0xff]   ;;  %v5747_v27 = vld [vmem:[%s5924_s6 + $0xe14] ss:$8 sps:$4 sm:$0xff]  }
 0x1c5   : > { %4098 = vmatpush2.bf16.msra.mxu0 %v5679_v28  ;;  %v5750_v28 = vld [vmem:[%s5924_s6 + $0xf14] ss:$8 sps:$4 sm:$0xff]  }
 0x1c6   : > { %4139 = vmatpush2.bf16.msra.mxu1 %v5682_v7  ;;  %4099 = vmatprep.subr.bf16.mxu0 %v5687_v63  ;;  %v5745_v7 = vld [vmem:[%s5924_s6 + $0xe10] ss:$8 sps:$4 sm:$0xff]  }
 0x1c7   : > { %4140 = vmatprep.subr.bf16.mxu1 %v5690_v29  ;;  %v5748_v63 = vld [vmem:[%s5924_s6 + $0xf10] ss:$8 sps:$4 sm:$0xff]   ;;  %v5753_v29 = vld [vmem:[%s5924_s6 + $0xe04] ss:$8 sps:$4 sm:$0xff]  }
 0x1c9   : > { %4100 = vmatpush2.bf16.msra.mxu0 %v5685_v31  ;;  %v5756_v31 = vld [vmem:[%s5924_s6 + $0xf04] ss:$8 sps:$4 sm:$0xff]  }
 0x1ca   : > { %4141 = vmatpush2.bf16.msra.mxu1 %v5688_v57  ;;  %4101 = vmatprep.subr.bf16.mxu0 %v5693_v33  ;;  %v5751_v57 = vld [vmem:[%s5924_s6 + $0xe00] ss:$8 sps:$4 sm:$0xff]  }
 0x1cb   : > { %4142 = vmatprep.subr.bf16.mxu1 %v5696_v34  ;;  %v5754_v33 = vld [vmem:[%s5924_s6 + $0xf00] ss:$8 sps:$4 sm:$0xff]   ;;  %v5759_v34 = vld [vmem:[%s5924_s6 + $0xef4] ss:$8 sps:$4 sm:$0xff]  }
 0x1cd   : > { %4102 = vmatpush2.bf16.msra.mxu0 %v5691_v37  ;;  %v5757_v37 = vld [vmem:[%s5924_s6 + $0xef0] ss:$8 sps:$4 sm:$0xff]  }
 0x1ce   : > { %4143 = vmatpush2.bf16.msra.mxu1 %v5694_v38  ;;  %4103 = vmatprep.subr.bf16.mxu0 %v5699_v39  ;;  %v5760_v38 = vld [vmem:[%s5924_s6 + $0xff0] ss:$8 sps:$4 sm:$0xff]   ;;  %v5765_v39 = vld [vmem:[%s5924_s6 + $0xee4] ss:$8 sps:$4 sm:$0xff]  }
 0x1cf   : > { %4144 = vmatprep.subr.bf16.mxu1 %v5702_v30  ;;  %v5768_v30 = vld [vmem:[%s5924_s6 + $0xfe4] ss:$8 sps:$4 sm:$0xff]  }
 0x1d1   : > { %4104 = vmatpush2.bf16.msra.mxu0 %v5697_v11  ;;  %v5763_v11 = vld [vmem:[%s5924_s6 + $0xee0] ss:$8 sps:$4 sm:$0xff]  }
 0x1d2   : > { %4145 = vmatpush2.bf16.msra.mxu1 %v5700_v41  ;;  %4105 = vmatprep.subr.bf16.mxu0 %v5705_v42  ;;  %v5766_v41 = vld [vmem:[%s5924_s6 + $0xfe0] ss:$8 sps:$4 sm:$0xff]   ;;  %v5771_v42 = vld [vmem:[%s5924_s6 + $0xed4] ss:$8 sps:$4 sm:$0xff]  }
 0x1d3   : > { %4146 = vmatprep.subr.bf16.mxu1 %v5708_v43  ;;  %v5774_v43 = vld [vmem:[%s5924_s6 + $0xfd4] ss:$8 sps:$4 sm:$0xff]  }
 0x1d5   : > { %4106 = vmatpush2.bf16.msra.mxu0 %v5703_v47  ;;  %v5777_v47 = vld [vmem:[%s5924_s6 + $0xec4] ss:$8 sps:$4 sm:$0xff]  }
 0x1d6   : > { %4147 = vmatpush2.bf16.msra.mxu1 %v5706_v49  ;;  %4157 = vmatprep.subr.bf16.mxu0 %v5711_v51  ;;  %v5780_v49 = vld [vmem:[%s5924_s6 + $0xfc4] ss:$8 sps:$4 sm:$0xff]   ;;  %v5775_v51 = vld [vmem:[%s5924_s6 + $0xec0] ss:$8 sps:$4 sm:$0xff]  }
 0x1d7   : > { %4198 = vmatprep.subr.bf16.mxu1 %v5714_v52  ;;  %v5778_v52 = vld [vmem:[%s5924_s6 + $0xfc0] ss:$8 sps:$4 sm:$0xff]  }
 0x1d8   : > { %v3863_v32 = vpop.f32.mrf.mxu0  ;;  %4108 = vmatmul.mubr.bf16.vlgmr.msra.gmra.mxu0 %v965_v21  ;;  %v5772_v21 = vld [vmem:[%s5924_s6 + $0xfd0] ss:$8 sps:$4 sm:$0xff]  }
 0x1d9   : > { %v3904_v59 = vpop.f32.mrf.mxu1  ;;  %4149 = vmatmul.mubr.bf16.vlgmr.msra.gmra.mxu1 %v987_v24  ;;  %v3864_v60 = vadd.f32 %v3863_v32, %v6403_v45  ;;  %4158 = vmatpush1.bf16.msra.mxu0 %v5709_v53  ;;  %v5786_v24 = vld [vmem:[%s5924_s6 + $0xfb4] ss:$8 sps:$4 sm:$0xff]   ;;  %v5781_v53 = vld [vmem:[%s5924_s6 + $0xeb0] ss:$8 sps:$4 sm:$0xff]   ;;  %v5790_v32 = vld [vmem:[%s5924_s6 + $0xfa0] ss:$8 sps:$4 sm:$0xff]  }
 0x1da   : > { %4199 = vmatpush1.bf16.msra.mxu1 %v5712_v54  ;;  %v3865_v0 = vpop.f32.mrf.mxu0  ;;  %4159 = vmatprep.subr.bf16.mxu0 %v5717_v16  ;;  %v5784_v54 = vld [vmem:[%s5924_s6 + $0xfb0] ss:$8 sps:$4 sm:$0xff]   ;;  %v5789_v16 = vld [vmem:[%s5924_s6 + $0xea4] ss:$8 sps:$4 sm:$0xff]  }
 0x1db   : > { %v3906_v1 = vpop.f32.mrf.mxu1  ;;  %4200 = vmatprep.subr.bf16.mxu1 %v5720_v55  ;;  %v6483_v4 = vadd.f32 %v3904_v59, %v3864_v60  ;;  %v3866_v5 = vadd.f32 %v3865_v0, %v6406_v48  ;;  %4189 = vmatprep.mubr.bf16.mxu0 %v986_v26  ;;  %v5729_v48 = vld [vmem:[%s5924_s6 + $0xe44] ss:$8 sps:$4 sm:$0xff]   ;;  %v5783_v26 = vld [vmem:[%s5924_s6 + $0xeb4] ss:$8 sps:$4 sm:$0xff]  }
 0x1dc   : > { %4230 = vmatprep.mubr.bf16.mxu1 %v990_v56  ;;  %v3867_v45 = vpop.f32.mrf.mxu0  ;;  %v5792_v55 = vld [vmem:[%s5924_s6 + $0xfa4] ss:$8 sps:$4 sm:$0xff]   ;;  %v5787_v56 = vld [vmem:[%s5924_s6 + $0xea0] ss:$8 sps:$4 sm:$0xff]   ;;  %v5795_v59 = vld [vmem:[%s5924_s6 + $0xe94] ss:$8 sps:$4 sm:$0xff]  }
 0x1dd   : > { %v3908_v6 = vpop.f32.mrf.mxu1  ;;  %v6486_v8 = vadd.f32 %v3906_v1, %v3866_v5  ;;  %4160 = vmatpush1.bf16.msra.mxu0 %v5715_v61  ;;  %v5798_v60 = vld [vmem:[%s5924_s6 + $0xf94] ss:$8 sps:$4 sm:$0xff]   ;;  %v5793_v61 = vld [vmem:[%s5924_s6 + $0xe90] ss:$8 sps:$4 sm:$0xff]   ;;  %v5801_v0 = vld [vmem:[%s5924_s6 + $0xe84] ss:$8 sps:$4 sm:$0xff]  }
 0x1de   : > { %4201 = vmatpush1.bf16.msra.mxu1 %v5718_v62  ;;  %v3868_v10 = vpop.f32.mrf.mxu0  ;;  %4161 = vmatprep.subr.bf16.mxu0 %v5723_v2  ;;  %v5796_v62 = vld [vmem:[%s5924_s6 + $0xf90] ss:$8 sps:$4 sm:$0xff]   ;;  %v5804_v1 = vld [vmem:[%s5924_s6 + $0xf84] ss:$8 sps:$4 sm:$0xff]   ;;  %v972_v2 = vrot.slane %v6459_v40, %v5974_v50  ;;  %v5802_v5 = vld [vmem:[%s5924_s6 + $0xf80] ss:$8 sps:$4 sm:$0xff]  }
 0x1df   : > { %v3909_v12 = vpop.f32.mrf.mxu1  ;;  %4202 = vmatprep.subr.bf16.mxu1 %v5726_v3  ;;  %v5799_v3 = vld [vmem:[%s5924_s6 + $0xe80] ss:$8 sps:$4 sm:$0xff]  }
 0x1e0   : > { %v988_v45 = vcombine.high %v972_v2, %v972_v2 }
 0x1e1   : > { %4162 = vmatpush1.bf16.msra.mxu0 %v5721_v9 }
 0x1e2   : > { %4203 = vmatpush1.bf16.msra.mxu1 %v5724_v36  ;;  %4163 = vmatprep.subr.bf16.mxu0 %v5729_v48 }
 0x1e3   : > { %4204 = vmatprep.subr.bf16.mxu1 %v5732_v13 }
 0x1e5   : > { %4164 = vmatpush1.bf16.msra.mxu0 %v5727_v14 }
 0x1e6   : > { %4205 = vmatpush1.bf16.msra.mxu1 %v5730_v15  ;;  %4165 = vmatprep.subr.bf16.mxu0 %v5735_v17 }
 0x1e7   : > { %4206 = vmatprep.subr.bf16.mxu1 %v5738_v18 }
 0x1e9   : > { %4166 = vmatpush1.bf16.msra.mxu0 %v5733_v19 }
 0x1ea   : > { %4207 = vmatpush1.bf16.msra.mxu1 %v5736_v20  ;;  %4167 = vmatprep.subr.bf16.mxu0 %v5741_v22 }
 0x1eb   : > { %4208 = vmatprep.subr.bf16.mxu1 %v5744_v58 }
 0x1ed   : > { %4168 = vmatpush1.bf16.msra.mxu0 %v5739_v23 }
 0x1ee   : > { %4209 = vmatpush1.bf16.msra.mxu1 %v5742_v25  ;;  %4169 = vmatprep.subr.bf16.mxu0 %v5747_v27 }
 0x1ef   : > { %4210 = vmatprep.subr.bf16.mxu1 %v5750_v28 }
 0x1f1   : > { %4170 = vmatpush1.bf16.msra.mxu0 %v5745_v7 }
 0x1f2   : > { %4211 = vmatpush1.bf16.msra.mxu1 %v5748_v63  ;;  %4171 = vmatprep.subr.bf16.mxu0 %v5753_v29 }
 0x1f3   : > { %4212 = vmatprep.subr.bf16.mxu1 %v5756_v31 }
 0x1f5   : > { %4172 = vmatpush1.bf16.msra.mxu0 %v5751_v57 }
 0x1f6   : > { %4213 = vmatpush1.bf16.msra.mxu1 %v5754_v33  ;;  %4173 = vmatprep.subr.bf16.mxu0 %v5759_v34 }
 0x1f7   : > { %4214 = vmatprep.subr.bf16.mxu1 %v5762_v35 }
 0x1f9   : > { %4174 = vmatpush2.bf16.msra.mxu0 %v5757_v37 }
 0x1fa   : > { %4215 = vmatpush2.bf16.msra.mxu1 %v5760_v38  ;;  %4175 = vmatprep.subr.bf16.mxu0 %v5765_v39 }
 0x1fb   : > { %4216 = vmatprep.subr.bf16.mxu1 %v5768_v30 }
 0x1fd   : > { %4176 = vmatpush2.bf16.msra.mxu0 %v5763_v11  ;;  %v5860_v11 = vmov 1983009808  }
 0x1fe   : > { %4217 = vmatpush2.bf16.msra.mxu1 %v5766_v41  ;;  %4177 = vmatprep.subr.bf16.mxu0 %v5771_v42  ;;  %v4243_v41 = vunpack.c.l.s4 %v5860_v11 }
 0x1ff   : > { %4218 = vmatprep.subr.bf16.mxu1 %v5774_v43 }
 0x201   : > { %4178 = vmatpush2.bf16.msra.mxu0 %v5769_v46 }
 0x202   : > { %4219 = vmatpush2.bf16.msra.mxu1 %v5772_v21  ;;  %4179 = vmatprep.subr.bf16.mxu0 %v5777_v47  ;;  %v4244_v47 = vunpack.c.0.s8 %v4243_v41 }
 0x203   : > { %4220 = vmatprep.subr.bf16.mxu1 %v5780_v49 }
 0x205   : > { %4180 = vmatpush2.bf16.msra.mxu0 %v5775_v51 }
 0x206   : > { %4221 = vmatpush2.bf16.msra.mxu1 %v5778_v52  ;;  %4181 = vmatprep.subr.bf16.mxu0 %v5783_v26 }
 0x207   : > { %4222 = vmatprep.subr.bf16.mxu1 %v5786_v24 }
 0x209   : > { %4182 = vmatpush2.bf16.msra.mxu0 %v5781_v53 }
 0x20a   : > { %4223 = vmatpush2.bf16.msra.mxu1 %v5784_v54  ;;  %4183 = vmatprep.subr.bf16.mxu0 %v5789_v16  ;;  %v4247_v16 = vsub.s32 %v4244_v47, %v5966_v44 }
 0x20b   : > { %4224 = vmatprep.subr.bf16.mxu1 %v5792_v55 }
 0x20d   : > { %4184 = vmatpush2.bf16.msra.mxu0 %v5787_v56 }
 0x20e   : > { %4225 = vmatpush2.bf16.msra.mxu1 %v5790_v32  ;;  %4185 = vmatprep.subr.bf16.mxu0 %v5795_v59  ;;  %v274_v59 = vld [vmem:[#allocation2] sm:$0xf] }
 0x20f   : > { %4226 = vmatprep.subr.bf16.mxu1 %v5798_v60 }
 0x211   : > { %4186 = vmatpush2.bf16.msra.mxu0 %v5793_v61 }
 0x212   : > { %4227 = vmatpush2.bf16.msra.mxu1 %v5796_v62  ;;  %4187 = vmatprep.subr.bf16.mxu0 %v5801_v0 }
 0x213   : > { %4228 = vmatprep.subr.bf16.mxu1 %v5804_v1 }
 0x215   : > { %4188 = vmatpush2.bf16.msra.mxu0 %v5799_v3 }
 0x216   : > { %4229 = vmatpush2.bf16.msra.mxu1 %v5802_v5 }
 0x218   : > { %v3945_v6 = vpop.f32.mrf.mxu0  ;;  %4190 = vmatmul.mubr.bf16.vlgmr.msra.gmra.mxu0 %v972_v2 }
 0x219   : > { %v3986_v9 = vpop.f32.mrf.mxu1  ;;  %4231 = vmatmul.mubr.bf16.vlgmr.msra.gmra.mxu1 %v988_v45  ;;  %v3946_v36 = vadd.f32 %v3945_v6, %v6483_v4 }
 0x21a   : > { %v3947_v10 = vpop.f32.mrf.mxu0 }
 0x21b   : > { %v3988_v12 = vpop.f32.mrf.mxu1  ;;  %v3987_v48 = vadd.f32 %v3986_v9, %v3946_v36  ;;  %v3948_v50 = vadd.f32 %v3947_v10, %v6486_v8 }
 0x21c   : > { %v3949_v40 = vpop.f32.mrf.mxu0 }
 0x21d   : > { %v3990_v13 = vpop.f32.mrf.mxu1  ;;  %v3989_v14 = vadd.f32 %v3988_v12, %v3948_v50 }
 0x21e   : > { %v3950_v15 = vpop.f32.mrf.mxu0 }
 0x21f   : > { %v3991_v17 = vpop.f32.mrf.mxu1 }
 0x258   : > { %v4027_v18 = vpop.f32.mrf.mxu0 }
 0x259   : > { %v4068_v19 = vpop.f32.mrf.mxu1  ;;  %v4028_v20 = vadd.f32 %v4027_v18, %v3987_v48 }
 0x25a   : > { %v4029_v22 = vpop.f32.mrf.mxu0 }
 0x25b   : > { %v4070_v58 = vpop.f32.mrf.mxu1  ;;  %v4069_v23 = vadd.f32 %v4068_v19, %v4028_v20  ;;  %v4030_v25 = vadd.f32 %v4029_v22, %v3989_v14 }
 0x25c   : > { %v4031_v27 = vpop.f32.mrf.mxu0 }
 0x25d   : > { %v4072_v28 = vpop.f32.mrf.mxu1  ;;  %v4071_v4 = vadd.f32 %v4070_v58, %v4030_v25 }
 0x25e   : > { %v4032_v7 = vpop.f32.mrf.mxu0 }
 0x25f   : > { %v4073_v63 = vpop.f32.mrf.mxu1 }
 0x298   : > { %v4109_v29 = vpop.f32.mrf.mxu0 }
 0x299   : > { %v4150_v31 = vpop.f32.mrf.mxu1  ;;  %v4110_v8 = vadd.f32 %v4109_v29, %v4069_v23 }
 0x29a   : > { %v4111_v57 = vpop.f32.mrf.mxu0 }
 0x29b   : > { %v4152_v33 = vpop.f32.mrf.mxu1  ;;  %v4151_v34 = vadd.f32 %v4150_v31, %v4110_v8  ;;  %v4112_v30 = vadd.f32 %v4111_v57, %v4071_v4 }
 0x29c   : > { %v4113_v35 = vpop.f32.mrf.mxu0 }
 0x29d   : > { %v4154_v37 = vpop.f32.mrf.mxu1  ;;  %v4153_v46 = vadd.f32 %v4152_v33, %v4112_v30 }
 0x29e   : > { %v4114_v38 = vpop.f32.mrf.mxu0 }
 0x29f   : > { %v4155_v39 = vpop.f32.mrf.mxu1 }
 0x2d8   : > { %v4191_v42 = vpop.f32.mrf.mxu0 }
 0x2d9   : > { %v4232_v43 = vpop.f32.mrf.mxu1  ;;  %v4192_v21 = vadd.f32 %v4191_v42, %v4151_v34 }
 0x2da   : > { %v4193_v49 = vpop.f32.mrf.mxu0 }
 0x2db   : > { %v4234_v51 = vpop.f32.mrf.mxu1  ;;  %v4194_v52 = vadd.f32 %v4193_v49, %v4153_v46  ;;  %v4233_v53 = vadd.f32 %v4232_v43, %v4192_v21 }
 0x2dc   : > { %v4195_v26 = vpop.f32.mrf.mxu0 }
 0x2dd   : > { %v4236_v24 = vpop.f32.mrf.mxu1  ;;  %v4235_v54 = vadd.f32 %v4234_v51, %v4194_v52 }
 0x2de   : > { %v4196_v55 = vpop.f32.mrf.mxu0 }
 0x2df   : > { %v4237_v56 = vpop.f32.mrf.mxu1  ;;  %v4241_v32 = vcombine.low %v4233_v53, %v4235_v54 }
 0x2e1   : > { %v4248_v60 = vrot.slane %v4241_v32, %v4247_v16  ;;  %4258 = sbr.rel (%p4991_p7) target bundleno = 987 (0x3db), region = 48 }
 0x2e3   : > { %v4250_v61 = vadd.f32 %v4248_v60, %v274_v59 }
 0x2e5   : > { %4254 = vst.msk [vmem:[#allocation2] sm:$0xf] %vm4253_vm5, %v4250_v61 }
 0x2e6   : > { %v4296_v62 = vld [vmem:[%s6681_s3 + $0x78] sm:$0xff]  ;;  %v5861_v0 = vmov 0.0   ;;  %v4295_v1 = vld [vmem:[%s6681_s3 + $0x70] sm:$0xff]  ;;  %v4294_v2 = vld [vmem:[%s6681_s3 + $0x68] sm:$0xff]  ;;  %v4264_v5 = vsub.s32 0, %v5966_v44  ;;  %v4268_v45 = vsub.s32 1, %v5966_v44 }
 0x2e7   : > { %4325 = vmatprep.subr.mxu0 %v5861_v0  ;;  %v4293_v3 = vld [vmem:[%s6681_s3 + $0x60] sm:$0xff]  ;;  %v4292_v6 = vld [vmem:[%s6681_s3 + $0x58] sm:$0xff]  ;;  %v4291_v36 = vld [vmem:[%s6681_s3 + $0x50] sm:$0xff]  ;;  %vm4322_vm6 = vcmask 523264  }
 0x2e8   : > { %4326 = vmatpush1.msra.mxu0 %v4296_v62  ;;  %v4260_v9 = vld [vmem:[%s6680_s2] sm:$0x3]  ;;  %v4290_v12 = vld [vmem:[%s6681_s3 + $0x48] sm:$0xff]  ;;  %v4288_v14 = vld [vmem:[%s6681_s3 + $0x38] sm:$0xff] }
 0x2e9   : > { %4327 = vmatprep.subr.mxu0 %v5861_v0  ;;  %v4265_v10 = vrot.slane %v4260_v9, %v4264_v5  ;;  %v4269_v44 = vrot.slane %v4260_v9, %v4268_v45  ;;  %v4289_v40 = vld [vmem:[%s6681_s3 + $0x40] sm:$0xff]  ;;  %v4287_v17 = vld [vmem:[%s6681_s3 + $0x30] sm:$0xff]  ;;  %v4286_v19 = vld [vmem:[%s6681_s3 + $0x28] sm:$0xff] }
 0x2ea   : > { %4328 = vmatpush1.msra.mxu0 %v4295_v1  ;;  %v4285_v22 = vld [vmem:[%s6681_s3 + $0x20] sm:$0xff]  ;;  %v4284_v23 = vld [vmem:[%s6681_s3 + $0x18] sm:$0xff]  ;;  %v4283_v25 = vld [vmem:[%s6681_s3 + $0x10] sm:$0xff] }
 0x2eb   : > { %4329 = vmatprep.subr.mxu0 %v5861_v0  ;;  %v4270_v48 = vcombine.low %v4265_v10, %v4269_v44  ;;  %v4282_v27 = vld [vmem:[%s6681_s3 + $0x8] sm:$0xff]  ;;  %v4281_v28 = vld [vmem:[%s6681_s3] sm:$0xff]  ;;  %v4304_v4 = vld [vmem:[%s6681_s3 + $0xb8] sm:$0xff] }
 0x2ec   : > { %4330 = vmatpush1.msra.mxu0 %v4294_v2  ;;  %v4259_v50 = vld [vmem:[#allocation2] sm:$0xf]  ;;  %v4303_v7 = vld [vmem:[%s6681_s3 + $0xb0] sm:$0xff]  ;;  %v4302_v63 = vld [vmem:[%s6681_s3 + $0xa8] sm:$0xff] }
 0x2ed   : > { %4331 = vmatprep.subr.mxu0 %v5861_v0  ;;  %v4277_v13 = vrot.slane %v4270_v48, %v4247_v16  ;;  %v4301_v29 = vld [vmem:[%s6681_s3 + $0xa0] sm:$0xff]  ;;  %v4300_v31 = vld [vmem:[%s6681_s3 + $0x98] sm:$0xff]  ;;  %v4299_v8 = vld [vmem:[%s6681_s3 + $0x90] sm:$0xff] }
 0x2ee   : > { %4332 = vmatpush1.msra.mxu0 %v4293_v3  ;;  %v4298_v57 = vld [vmem:[%s6681_s3 + $0x88] sm:$0xff]  ;;  %v4297_v33 = vld [vmem:[%s6681_s3 + $0x80] sm:$0xff] }
 0x2ef   : > { %4333 = vmatprep.subr.mxu0 %v5861_v0  ;;  %v4279_v15 = vadd.f32 %v4277_v13, %v4259_v50  ;;  %v4992_v34 = vld [vmem:[%s6682_s4] ss:$0 sm:$0xff] }
 0x2f0   : > { %4334 = vmatpush1.msra.mxu0 %v4292_v6 }
 0x2f1   : > { %4335 = vmatprep.subr.mxu0 %v5861_v0  ;;  %v4280_v18 = vmax.f32 %v4279_v15, 0.0 }
 0x2f2   : > { %4336 = vmatpush1.msra.mxu0 %v4291_v36 }
 0x2f3   : > { %4337 = vmatprep.subr.mxu0 %v5861_v0  ;;  %v4319_v20 = vrot.slane %v4280_v18, %v4247_v16 }
 0x2f4   : > { %4338 = vmatpush1.msra.mxu0 %v4290_v12 }
 0x2f5   : > { %4339 = vmatprep.subr.mxu0 %v5861_v0  ;;  %v4320_v58 = vcombine.high %v4319_v20, %v4319_v20 }
 0x2f6   : > { %4340 = vmatpush1.msra.mxu0 %v4289_v40 }
 0x2f7   : > { %4341 = vmatprep.subr.mxu0 %v5861_v0  ;;  %4993 = vmatprep.mubr.msk.f32.mxu0 %vm4322_vm6, %v4320_v58 }
 0x2f8   : > { %4342 = vmatpush1.msra.mxu0 %v4288_v14 }
 0x2f9   : > { %4343 = vmatprep.subr.mxu0 %v5861_v0 }
 0x2fa   : > { %4344 = vmatpush1.msra.mxu0 %v4287_v17 }
 0x2fb   : > { %4345 = vmatprep.subr.mxu0 %v5861_v0 }
 0x2fc   : > { %4346 = vmatpush1.msra.mxu0 %v4286_v19 }
 0x2fd   : > { %4347 = vmatprep.subr.mxu0 %v5861_v0 }
 0x2fe   : > { %4348 = vmatpush1.msra.mxu0 %v4285_v22 }
 0x2ff   : > { %4349 = vmatprep.subr.mxu0 %v5861_v0 }
 0x300   : > { %4350 = vmatpush1.msra.mxu0 %v4284_v23 }
 0x301   : > { %4351 = vmatprep.subr.mxu0 %v5861_v0 }
 0x302   : > { %4352 = vmatpush1.msra.mxu0 %v4283_v25 }
 0x303   : > { %4353 = vmatprep.subr.mxu0 %v5861_v0 }
 0x304   : > { %4354 = vmatpush1.msra.mxu0 %v4282_v27 }
 0x305   : > { %4355 = vmatprep.subr.mxu0 %v5861_v0 }
 0x306   : > { %4356 = vmatpush1.msra.mxu0 %v4281_v28 }
 0x307   : > { %4373 = vmatprep.subr.mxu0 %v5861_v0 }
 0x308   : > { %4374 = vmatpush2.msra.mxu0 %v4304_v4 }
 0x309   : > { %4375 = vmatprep.subr.mxu0 %v5861_v0 }
 0x30a   : > { %4376 = vmatpush2.msra.mxu0 %v4303_v7 }
 0x30b   : > { %4377 = vmatprep.subr.mxu0 %v5861_v0 }
 0x30c   : > { %4378 = vmatpush2.msra.mxu0 %v4302_v63 }
 0x30d   : > { %4379 = vmatprep.subr.mxu0 %v5861_v0 }
 0x30e   : > { %4380 = vmatpush2.msra.mxu0 %v4301_v29 }
 0x30f   : > { %4381 = vmatprep.subr.mxu0 %v5861_v0 }
 0x310   : > { %4382 = vmatpush2.msra.mxu0 %v4300_v31 }
 0x311   : > { %4383 = vmatprep.subr.mxu0 %v5861_v0 }
 0x312   : > { %4384 = vmatpush2.msra.mxu0 %v4299_v8 }
 0x313   : > { %4385 = vmatprep.subr.mxu0 %v5861_v0 }
 0x314   : > { %4386 = vmatpush2.msra.mxu0 %v4298_v57 }
 0x315   : > { %4387 = vmatprep.subr.mxu0 %v5861_v0 }
 0x316   : > { %4388 = vmatpush2.msra.mxu0 %v4297_v33 }
 0x317   : > { %4390 = vmatmul.mubr.f32.vlgmr.msra.gmra.mxu0 %v4319_v20 }
 0x3d7   : > { %v4391_v35 = vpop.f32.mrf.mxu0 }
 0x3d8   : > { %v4392_v37 = vadd.f32 %v4992_v34, %v4391_v35 }
 0x3d9   : > { %v4393_v38 = vpop.f32.mrf.mxu0 }
 0x3da   : > { %4395 = vst [vmem:[#allocation3] sm:$0x3] %v4392_v37 }
 0x3db PF: > { %p6654_p8 = scmp.eq.s32.totalorder %s4470_s21, 2  ;;  %s5862_s18 = smov [#allocation3]  }
 0x3dc   : > { %s4405_s23 = sshll.u32 %s5862_s18, 4  ;;  %s4406_s23 = int_to_ptr.vmem [resolvable:$true] %s4405_s23 }
 0x3dd   : > { %s5806_s24 = scalar_lea.vmem %s4406_s23, 32  ;;  %p5813_p12 = scmp.lt.s32.totalorder %s4406_s23, %s4406_s23 }
 0x3de   : > { %p5807_p9 = scmp.ne.s32.totalorder %s4406_s23, %s5806_s24  ;;  %p5814_p13 = scmp.lt.s32.totalorder %s5806_s24, %s5806_s24 }
 0x3e0   : > { %p5808_p10 = pnand %p5807_p9, %p6654_p8  ;;  %p5815_p0 = por %p5814_p13, %p5813_p12 }
 0x3e2   : > { %p5809_p11 = pneg %p5808_p10 }
 0x3e4   : > { %p5816_p1 = pnand %p5815_p0, %p5809_p11 }
 0x3e6   : > { %5819 = shalt.err (!%p5816_p1)
}
 0x3e7   : > { %5000 = dma.vmem_to_hbm [thread:$0]  (%p6654_p8), %s4406_s23, 32, %s6683_s5, [#allocation4]  }
 0x3e8   : > { %5843 = dma.done.wait (%p6654_p8), [#allocation4], 32  }
 0x3e9   : > { %5845 = vsyncadd (%p6654_p8), [#allocation4], 4294967264 }
 0x3ea PF: > { %s16_s20 = sadd.s32 1, %s5856_s20   ;;  %s6685_s18 = smov %s5852_s19 }
 0x3eb   : > { %p13_p2 = scmp.ge.s32.totalorder %s16_s20, 5   ;;  %s6686_s19 = smov %s6688_s22 }
 0x3ed   :  { %15 = sbr.rel (!%p13_p2) target bundleno = 2 (0x2), region = 79 }
 0x3f2   :  { %4418 = vsyncpa [#allocation4], 1 }
 0x3f3   :  { %4420 = vsyncpa [#allocation4 + $0x1], 1 }

</bundles_post_ra>
